<compile_context>
chip_gen: v7x
topology: tpu7x:2x2x1
jax: 0.10.0
libtpu: 0.0.40
codegen_flags: <defaults>
</compile_context>

<pallas_src>
import jax
import jax.numpy as jnp
from jax import lax
from jax.experimental import pallas as pl
from jax.experimental.pallas import tpu as pltpu

# ----------------------------- configuration --------------------------------
CHANNEL = 4       # channle
DIM = 8           # dim
HEAD = 2          # head -> Mamba2 headdim
B = 2
H = W = 8         # square spatial (required by the PyTorch forward)
L = H             # Mamba sequence length for both branches
BN = B * W        # sequences per branch (16)

# Mamba2 derived sizes (mamba_ssm defaults: expand=2, d_conv=4, ngroups=1,
# rmsnorm=True, norm_before_gate=False, bias=False, conv_bias=True)
D_INNER = 2 * DIM                 # 16
HEADDIM = HEAD                    # 2
NHEADS = D_INNER // HEADDIM       # 8
D_STATE = DIM                     # 8
NGROUPS = 1
D_CONV = 4
CONV_DIM = D_INNER + 2 * NGROUPS * D_STATE                 # 32
D_IN_PROJ = 2 * D_INNER + 2 * NGROUPS * D_STATE + NHEADS   # 56
RMS_EPS = 1e-5

NZ = D_INNER * BN                 # 256 lanes  (channel-major, sequence-minor)
NBC = CONV_DIM * BN               # 512 lanes
NST = D_STATE * NGROUPS * BN      # 128 lanes


# ----------------------------- Pallas kernels -------------------------------
def _matmul_bias_kernel(a_ref, b_ref, bias_ref, o_ref):
    o_ref[...] = jnp.dot(a_ref[...], b_ref[...],
                         preferred_element_type=jnp.float32) + bias_ref[...]


def matmul_bias(a, b, bias):
    """a: (M, K), b: (K, N), bias: (N,) -> (M, N) float32. Single VMEM block."""
    a = a.astype(jnp.float32)
    b = b.astype(jnp.float32)
    M, K = a.shape
    N = b.shape[1]
    return pl.pallas_call(
        _matmul_bias_kernel,
        out_shape=jax.ShapeDtypeStruct((M, N), jnp.float32),
        grid=(1,),
        in_specs=[pl.BlockSpec((M, K), lambda i: (0, 0)),
                  pl.BlockSpec((K, N), lambda i: (0, 0)),
                  pl.BlockSpec((1, N), lambda i: (0, 0))],
        out_specs=pl.BlockSpec((M, N), lambda i: (0, 0)),
    )(a, b, bias.reshape(1, N).astype(jnp.float32))


def _mamba_branch_kernel(z_ref, xbc_ref, dt_ref, cw_ref, cb_ref,
                         a_ref, d_ref, dtb_ref, nw_ref, o_ref):
    """One ViM branch (all 16 sequences), lane-dense (L, feature*BN) layout.
    Lanes are (feature-major, sequence-minor), t runs along sublanes."""
    f32 = jnp.float32
    z = z_ref[0]        # (L, NZ)   gate (pre-conv, straight from in_proj)
    xbc = xbc_ref[0]    # (L, NBC)  [x | B | C] conv input
    dtr = dt_ref[0]     # (L, NZ)   raw dt, already head->channel broadcast
    cw = cw_ref[0]      # (D_CONV, NBC) per-channel conv taps (tiled over seqs)
    cb = cb_ref[0]      # (1, NBC)
    A = a_ref[0]        # (1, NZ)   -exp(A_log), per channel, tiled
    Dv = d_ref[0]       # (1, NZ)
    dtb = dtb_ref[0]    # (1, NZ)
    nw = nw_ref[0]      # (1, NZ)

    r8 = lax.broadcasted_iota(jnp.int32, (L, L), 0)
    c8 = lax.broadcasted_iota(jnp.int32, (L, L), 1)

    # ---- causal depthwise Conv1d (K=D_CONV, left pad) + SiLU, along t -------
    # shift-down-by-j with zero fill expressed as a tiny constant (L,L) matmul.
    conv = xbc * cw[D_CONV - 1:D_CONV, :]
    for j in range(1, D_CONV):
        sh = ((r8 - c8) == j).astype(f32)
        conv = conv + jnp.dot(sh, xbc, preferred_element_type=f32) \
            * cw[D_CONV - 1 - j:D_CONV - j, :]
    conv = conv + cb
    xbc_a = conv * jax.nn.sigmoid(conv)                       # SiLU

    xs = xbc_a[:, :NZ]                    # (L, NZ)  x,   lanes f*BN + b
    Bm = xbc_a[:, NZ:NZ + NST]            # (L, NST) B,   lanes n*BN + b
    Cm = xbc_a[:, NZ + NST:NZ + 2 * NST]  # (L, NST) C

    # ---- SSD (quadratic within-chunk, L <= chunk_size) SSM ------------------
    dt = jax.nn.softplus(dtr + dtb)                           # (L, NZ)
    dtA = dt * A
    lt = (r8 >= c8).astype(f32)
    cumA = jnp.dot(lt, dtA, preferred_element_type=f32)       # inclusive cumsum_t
    dtx = dt * xs
    y = Dv * xs                                               # skip (D) term

    # segmented (per-sequence) n-sum + broadcast-to-channels matrix
    pi = lax.broadcasted_iota(jnp.int32, (NST, NZ), 0)
    qi = lax.broadcasted_iota(jnp.int32, (NST, NZ), 1)
    S = ((pi % BN) == (qi % BN)).astype(f32)

    for j in range(L):                                        # static, unrolled
        if j == 0:
            Bsh, cumAsh, dtxsh = Bm, cumA, dtx
        else:
            sh = ((r8 - c8) == j).astype(f32)
            Bsh = jnp.dot(sh, Bm, preferred_element_type=f32)
            cumAsh = jnp.dot(sh, cumA, preferred_element_type=f32)
            dtxsh = jnp.dot(sh, dtx, preferred_element_type=f32)
        # diag[t, (f,b)] = C_t . B_{t-j}  (per sequence b, broadcast over f)
        diag = jnp.dot(Cm * Bsh, S, preferred_element_type=f32)
        y = y + diag * jnp.exp(cumA - cumAsh) * dtxsh

    # ---- gated RMSNorm (per token, per sequence; group = D_INNER channels) --
    yz = y * (z * jax.nn.sigmoid(z))
    gi = lax.broadcasted_iota(jnp.int32, (NZ, NZ), 0)
    gj = lax.broadcasted_iota(jnp.int32, (NZ, NZ), 1)
    G = ((gi % BN) == (gj % BN)).astype(f32)                  # same-sequence sum
    ssq = jnp.dot(yz * yz, G, preferred_element_type=f32)
    rstd = lax.rsqrt(ssq * (1.0 / D_INNER) + RMS_EPS)
    o_ref[...] = yz * rstd * nw


def fused_mamba(z_in, xbc_in, dt_in, mp):
    """z_in/dt_in: (2, L, NZ); xbc_in: (2, L, NBC) -> (L, 2*NZ)."""
    return pl.pallas_call(
        _mamba_branch_kernel,
        out_shape=jax.ShapeDtypeStruct((L, 2 * NZ), jnp.float32),
        grid=(2,),
        in_specs=[
            pl.BlockSpec((1, L, NZ), lambda g: (g, 0, 0)),
            pl.BlockSpec((1, L, NBC), lambda g: (g, 0, 0)),
            pl.BlockSpec((1, L, NZ), lambda g: (g, 0, 0)),
            pl.BlockSpec((1, D_CONV, NBC), lambda g: (g, 0, 0)),
            pl.BlockSpec((1, 1, NBC), lambda g: (g, 0, 0)),
            pl.BlockSpec((1, 1, NZ), lambda g: (g, 0, 0)),
            pl.BlockSpec((1, 1, NZ), lambda g: (g, 0, 0)),
            pl.BlockSpec((1, 1, NZ), lambda g: (g, 0, 0)),
            pl.BlockSpec((1, 1, NZ), lambda g: (g, 0, 0)),
        ],
        out_specs=pl.BlockSpec((L, NZ), lambda g: (0, g)),
        compiler_params=pltpu.CompilerParams(
            dimension_semantics=("parallel",)),   # r / c branches on 2 TCs (v7x)
    )(z_in, xbc_in, dt_in, mp['conv_w'], mp['conv_b'],
      mp['A'], mp['D'], mp['dt_bias'], mp['norm_w'])


# ----------------------------- glue (XLA) ------------------------------------
def im2col_3x3_nhwc(x):
    """x: (B, H, W, C) -> (B*H*W, C*9), feature order (c, kh, kw)."""
    Bb, Hh, Ww, C = x.shape
    xp = jnp.pad(x, ((0, 0), (1, 1), (1, 1), (0, 0)))
    cols = [xp[:, kh:kh + Hh, kw:kw + Ww, :] for kh in range(3) for kw in range(3)]
    pat = jnp.stack(cols, axis=-1)                  # (B, H, W, C, 9)
    return pat.reshape(Bb * Hh * Ww, C * 9)


def expand_grouped_weight(w, groups):
    """Grouped Conv2d weight (O, Cin//g, kh, kw) -> dense block-diagonal weight."""
    O, ipg, kh, kw = w.shape
    Cin = ipg * groups
    opg = O // groups
    wfull = jnp.zeros((O, Cin, kh, kw), w.dtype)
    for g in range(groups):
        wfull = wfull.at[g * opg:(g + 1) * opg, g * ipg:(g + 1) * ipg].set(
            w[g * opg:(g + 1) * opg])
    return wfull


# ----------------------------- param prep (hoisted, one-time) ----------------
def prepare_params(p):
    f32 = jnp.float32
    Wrp = p['r_patch_w'].reshape(DIM, CHANNEL * 9).T.astype(f32)      # (36, 8)
    Wcp = p['c_patch_w'].reshape(DIM, CHANNEL * 9).T.astype(f32)
    Win_r = p['r_p']['in_proj_w'].T.astype(f32)                       # (8, 56)
    Win_c = p['c_p']['in_proj_w'].T.astype(f32)
    # front GEMM: [r | c | zxbcdt_r | zxbcdt_c]  ->  N = 8+8+56+56 = 128 lanes
    W_front = jnp.concatenate([Wrp, Wcp, Wrp @ Win_r, Wcp @ Win_c], axis=1)
    b_front = jnp.concatenate([p['r_patch_b'], p['c_patch_b'],
                               p['r_patch_b'] @ Win_r, p['c_patch_b'] @ Win_c])

    def mamba_prep(mp):
        wk = jnp.transpose(mp['conv1d_w'][:, 0, :], (1, 0))           # (K, CONV_DIM)
        A_ch = jnp.repeat(-jnp.exp(mp['A_log']), HEADDIM)             # head -> channel
        dtb_ch = jnp.repeat(mp['dt_bias'], HEADDIM)
        D_ch = jnp.repeat(mp['D'], HEADDIM)
        return dict(
            conv_w=jnp.repeat(wk, BN, axis=1),                        # (K, NBC)
            conv_b=jnp.repeat(mp['conv1d_b'], BN).reshape(1, NBC),
            A=jnp.repeat(A_ch, BN).reshape(1, NZ),
            dt_bias=jnp.repeat(dtb_ch, BN).reshape(1, NZ),
            D=jnp.repeat(D_ch, BN).reshape(1, NZ),
            norm_w=jnp.repeat(mp['norm_w'], BN).reshape(1, NZ),
        )

    mr, mc = mamba_prep(p['r_p']), mamba_prep(p['c_p'])
    mamba = {k: jnp.stack([mr[k], mc[k]]).astype(f32) for k in mr}

    # tail GEMM: folds out_proj, PE convs, 1x1 unpatch convs, biases and adds.
    W_ru = p['r_unpatch_w'][:, :, 0, 0].astype(f32)                   # (8, 4)
    W_cu = p['c_unpatch_w'][:, :, 0, 0].astype(f32)
    Wrpe = expand_grouped_weight(p['r_pe_w'], CHANNEL).reshape(DIM, DIM * 9).astype(f32)
    Wcpe = expand_grouped_weight(p['c_pe_w'], CHANNEL).reshape(DIM, DIM * 9).astype(f32)
    W_tail = jnp.concatenate([
        p['r_p']['out_proj_w'].T.astype(f32) @ W_ru,                  # (16, 4)
        p['c_p']['out_proj_w'].T.astype(f32) @ W_cu,                  # (16, 4)
        Wrpe.T @ W_ru,                                                # (72, 4)
        Wcpe.T @ W_cu,                                                # (72, 4)
    ], axis=0)                                                        # (176, 4)
    b_tail = (p['r_unpatch_b'] + p['c_unpatch_b']
              + p['r_pe_b'] @ W_ru + p['c_pe_b'] @ W_cu)

    return dict(W_front=W_front.astype(f32), b_front=b_front.astype(f32),
                mamba=mamba, W_tail=W_tail.astype(f32), b_tail=b_tail.astype(f32))


# ----------------------------- ViMBlock forward ------------------------------
def vim_block_forward(x, prep):
    Bb, Cin, Hh, Ww = x.shape
    assert Hh == Ww, "PyTorch ViMBlock implicitly requires H == W"
    x_nhwc = jnp.transpose(x, (0, 2, 3, 1)).astype(jnp.float32)

    # ---- pallas call 1: patch embeddings + folded Mamba in_proj (both branches)
    front = matmul_bias(im2col_3x3_nhwc(x_nhwc), prep['W_front'], prep['b_front'])
    front = front.reshape(Bb, Hh, Ww, 2 * DIM + 2 * D_IN_PROJ)
    r = front[..., 0:DIM]                                   # (B, H, W, DIM)
    c = front[..., DIM:2 * DIM]
    zx_r = front[..., 2 * DIM:2 * DIM + D_IN_PROJ]          # (B, H, W, 56)
    zx_c = front[..., 2 * DIM + D_IN_PROJ:]

    # sequence layouts: r-branch seq=(b,w), t=h ; c-branch seq=(b,h), t=w
    zx_r_s = zx_r.transpose(1, 0, 2, 3).reshape(L, BN, D_IN_PROJ)   # (t, seq, feat)
    zx_c_s = zx_c.transpose(2, 0, 1, 3).reshape(L, BN, D_IN_PROJ)

    def split_branch(zx):
        z = zx[:, :, :D_INNER].transpose(0, 2, 1).reshape(L, NZ)
        xbc = zx[:, :, D_INNER:D_INNER + CONV_DIM].transpose(0, 2, 1).reshape(L, NBC)
        dt = jnp.repeat(zx[:, :, D_INNER + CONV_DIM:], HEADDIM, axis=-1)
        dt = dt.transpose(0, 2, 1).reshape(L, NZ)
        return z, xbc, dt

    z_r, xbc_r, dt_r = split_branch(zx_r_s)
    z_c, xbc_c, dt_c = split_branch(zx_c_s)

    # ---- pallas call 2: fused dwconv+SiLU + SSD scan + gated RMSNorm ---------
    ssm = fused_mamba(jnp.stack([z_r, z_c]), jnp.stack([xbc_r, xbc_c]),
                      jnp.stack([dt_r, dt_c]), prep['mamba'])       # (L, 2*NZ)

    # back to (b, i, j) row order (i, j = final NCHW spatial axes; H == W)
    ssm_r = ssm[:, :NZ].reshape(L, D_INNER, Bb, Ww)        # (h, f, b, w)
    ssm_r = ssm_r.transpose(2, 3, 0, 1).reshape(Bb * Hh * Ww, D_INNER)
    ssm_c = ssm[:, NZ:].reshape(L, D_INNER, Bb, Hh)        # (w, f, b, h)
    ssm_c = ssm_c.transpose(2, 0, 3, 1).reshape(Bb * Hh * Ww, D_INNER)

    # ---- pallas call 3: fused epilogue GEMM ----------------------------------
    tail_in = jnp.concatenate(
        [ssm_r, ssm_c, im2col_3x3_nhwc(r), im2col_3x3_nhwc(c)], axis=-1)  # (BHW, 176)
    out = matmul_bias(tail_in, prep['W_tail'], prep['b_tail'])            # (BHW, 4)
    return out.reshape(Bb, Hh, Ww, CHANNEL).transpose(0, 3, 1, 2)


# ----------------------------- deterministic init ----------------------------
def init_params(key):
    keys = iter(jax.random.split(key, 40))

    def nrm(shape, scale=0.1):
        return scale * jax.random.normal(next(keys), shape, dtype=jnp.float32)

    def mamba_params():
        return dict(
            in_proj_w=nrm((D_IN_PROJ, DIM)),
            conv1d_w=nrm((CONV_DIM, 1, D_CONV)),
            conv1d_b=nrm((CONV_DIM,)),
            dt_bias=jnp.linspace(-4.0, -2.0, NHEADS, dtype=jnp.float32),
            A_log=jnp.log(jnp.linspace(1.0, 8.0, NHEADS, dtype=jnp.float32)),
            D=jnp.ones((NHEADS,), jnp.float32),
            norm_w=jnp.ones((D_INNER,), jnp.float32),
            out_proj_w=nrm((DIM, D_INNER)),
        )

    return dict(
        r_patch_w=nrm((DIM, CHANNEL, 3, 3)), r_patch_b=nrm((DIM,)),
        c_patch_w=nrm((DIM, CHANNEL, 3, 3)), c_patch_b=nrm((DIM,)),
        r_pe_w=nrm((DIM, DIM // CHANNEL, 3, 3)), r_pe_b=nrm((DIM,)),
        c_pe_w=nrm((DIM, DIM // CHANNEL, 3, 3)), c_pe_b=nrm((DIM,)),
        r_unpatch_w=nrm((DIM, CHANNEL, 1, 1)), r_unpatch_b=nrm((CHANNEL,)),
        c_unpatch_w=nrm((DIM, CHANNEL, 1, 1)), c_unpatch_b=nrm((CHANNEL,)),
        r_p=mamba_params(),
        c_p=mamba_params(),
    )


if __name__ == "__main__":
    key = jax.random.PRNGKey(0)
    pkey, xkey = jax.random.split(key)
    params = init_params(pkey)
    prep = prepare_params(params)          # one-time weight folding / tiling
    x = jax.random.normal(xkey, (B, CHANNEL, H, W), dtype=jnp.float32)

    fwd = jax.jit(vim_block_forward)
    y = fwd(x, prep)
    jax.block_until_ready(y)
    assert y.shape == (B, CHANNEL, H, W), y.shape
    assert bool(jnp.all(jnp.isfinite(y)))
    print("KERNEL_OK")
</pallas_src>

<mosaic_0001>
module attributes {stable_mosaic.version = 11 : i64} {
  func.func @_matmul_bias_kernel(%arg0: i32, %arg1: memref<128x36xf32, #tpu.memory_space<vmem>>, %arg2: memref<36x128xf32, #tpu.memory_space<vmem>>, %arg3: memref<1x128xf32, #tpu.memory_space<vmem>>, %arg4: memref<128x128xf32, #tpu.memory_space<vmem>>) attributes {dimension_semantics = [#tpu.dimension_semantics<arbitrary>], iteration_bounds = array<i64: 1>, scalar_prefetch = 0 : i64, scratch_operands = 0 : i64, tpu.core_type = #tpu.core_type<tc>, window_params = [{pipeline_mode = #tpu.pipeline_mode<synchronous>, transform_indices = @transform_0, window_bounds = array<i64: 128, 36>}, {pipeline_mode = #tpu.pipeline_mode<synchronous>, transform_indices = @transform_1, window_bounds = array<i64: 36, 128>}, {pipeline_mode = #tpu.pipeline_mode<synchronous>, transform_indices = @transform_2, window_bounds = array<i64: 1, 128>}, {pipeline_mode = #tpu.pipeline_mode<synchronous>, transform_indices = @transform_3, window_bounds = array<i64: 128, 128>}]} {
    %c0 = arith.constant 0 : index
    %c0_0 = arith.constant 0 : index
    %0 = vector.load %arg1[%c0, %c0_0] : memref<128x36xf32, #tpu.memory_space<vmem>>, vector<128x36xf32>
    %c0_1 = arith.constant 0 : index
    %c0_2 = arith.constant 0 : index
    %1 = vector.load %arg2[%c0_1, %c0_2] : memref<36x128xf32, #tpu.memory_space<vmem>>, vector<36x128xf32>
    %cst = arith.constant dense<0.000000e+00> : vector<128x128xf32>
    %2 = tpu.matmul %0, %1, %cst {dimension_numbers = #tpu.dot_dimension_numbers<[1], [0], [0], [1], [0, 0, 1, 1], [], []>} : vector<128x36xf32>, vector<36x128xf32>, vector<128x128xf32> -> vector<128x128xf32>
    %c0_3 = arith.constant 0 : index
    %c0_4 = arith.constant 0 : index
    %3 = vector.load %arg3[%c0_3, %c0_4] : memref<1x128xf32, #tpu.memory_space<vmem>>, vector<1x128xf32>
    %4 = vector.broadcast %3 : vector<1x128xf32> to vector<128x128xf32>
    %5 = arith.addf %2, %4 : vector<128x128xf32>
    %c0_5 = arith.constant 0 : index
    %c0_6 = arith.constant 0 : index
    %6 = vector.load %arg4[%c0_5, %c0_6] : memref<128x128xf32, #tpu.memory_space<vmem>>, vector<128x128xf32>
    tpu.vector_store %arg4[%c0_5, %c0_6], %5 {strides = array<i32>} : memref<128x128xf32, #tpu.memory_space<vmem>>, vector<128x128xf32>,
    return
  }
  func.func @transform_0(%arg0: i32) -> (i32, i32) {
    %c0_i32 = arith.constant 0 : i32
    %c0_i32_0 = arith.constant 0 : i32
    %c0_i32_1 = arith.constant 0 : i32
    return %c0_i32, %c0_i32_0 : i32, i32
  }
  func.func @transform_1(%arg0: i32) -> (i32, i32) {
    %c0_i32 = arith.constant 0 : i32
    %c0_i32_0 = arith.constant 0 : i32
    %c0_i32_1 = arith.constant 0 : i32
    return %c0_i32, %c0_i32_0 : i32, i32
  }
  func.func @transform_2(%arg0: i32) -> (i32, i32) {
    %c0_i32 = arith.constant 0 : i32
    %c0_i32_0 = arith.constant 0 : i32
    %c0_i32_1 = arith.constant 0 : i32
    return %c0_i32, %c0_i32_0 : i32, i32
  }
  func.func @transform_3(%arg0: i32) -> (i32, i32) {
    %c0_i32 = arith.constant 0 : i32
    %c0_i32_0 = arith.constant 0 : i32
    %c0_i32_1 = arith.constant 0 : i32
    return %c0_i32, %c0_i32_0 : i32, i32
  }
}

module attributes {stable_mosaic.version = 11 : i64} {
  func.func @_mamba_branch_kernel(%arg0: i32, %arg1: memref<1x8x256xf32, #tpu.memory_space<vmem>>, %arg2: memref<1x8x512xf32, #tpu.memory_space<vmem>>, %arg3: memref<1x8x256xf32, #tpu.memory_space<vmem>>, %arg4: memref<1x4x512xf32, #tpu.memory_space<vmem>>, %arg5: memref<1x1x512xf32, #tpu.memory_space<vmem>>, %arg6: memref<1x1x256xf32, #tpu.memory_space<vmem>>, %arg7: memref<1x1x256xf32, #tpu.memory_space<vmem>>, %arg8: memref<1x1x256xf32, #tpu.memory_space<vmem>>, %arg9: memref<1x1x256xf32, #tpu.memory_space<vmem>>, %arg10: memref<8x256xf32, #tpu.memory_space<vmem>>) attributes {dimension_semantics = [#tpu.dimension_semantics<parallel>], iteration_bounds = array<i64: 2>, scalar_prefetch = 0 : i64, scratch_operands = 0 : i64, tpu.core_type = #tpu.core_type<tc>, window_params = [{transform_indices = @transform_0, window_bounds = array<i64: 1, 8, 256>}, {transform_indices = @transform_1, window_bounds = array<i64: 1, 8, 512>}, {transform_indices = @transform_2, window_bounds = array<i64: 1, 8, 256>}, {transform_indices = @transform_3, window_bounds = array<i64: 1, 4, 512>}, {transform_indices = @transform_4, window_bounds = array<i64: 1, 1, 512>}, {transform_indices = @transform_5, window_bounds = array<i64: 1, 1, 256>}, {transform_indices = @transform_6, window_bounds = array<i64: 1, 1, 256>}, {transform_indices = @transform_7, window_bounds = array<i64: 1, 1, 256>}, {transform_indices = @transform_8, window_bounds = array<i64: 1, 1, 256>}, {transform_indices = @transform_9, window_bounds = array<i64: 8, 256>}]} {
    %c0 = arith.constant 0 : index
    %c0_0 = arith.constant 0 : index
    %c0_1 = arith.constant 0 : index
    %0 = vector.load %arg1[%c0, %c0_0, %c0_1] : memref<1x8x256xf32, #tpu.memory_space<vmem>>, vector<1x8x256xf32>
    %1 = vector.shape_cast %0 : vector<1x8x256xf32> to vector<8x256xf32>
    %c0_2 = arith.constant 0 : index
    %c0_3 = arith.constant 0 : index
    %c0_4 = arith.constant 0 : index
    %2 = vector.load %arg2[%c0_2, %c0_3, %c0_4] : memref<1x8x512xf32, #tpu.memory_space<vmem>>, vector<1x8x512xf32>
    %3 = vector.shape_cast %2 : vector<1x8x512xf32> to vector<8x512xf32>
    %c0_5 = arith.constant 0 : index
    %c0_6 = arith.constant 0 : index
    %c0_7 = arith.constant 0 : index
    %4 = vector.load %arg3[%c0_5, %c0_6, %c0_7] : memref<1x8x256xf32, #tpu.memory_space<vmem>>, vector<1x8x256xf32>
    %5 = vector.shape_cast %4 : vector<1x8x256xf32> to vector<8x256xf32>
    %c0_8 = arith.constant 0 : index
    %c0_9 = arith.constant 0 : index
    %c0_10 = arith.constant 0 : index
    %6 = vector.load %arg4[%c0_8, %c0_9, %c0_10] : memref<1x4x512xf32, #tpu.memory_space<vmem>>, vector<1x4x512xf32>
    %7 = vector.shape_cast %6 : vector<1x4x512xf32> to vector<4x512xf32>
    %c0_11 = arith.constant 0 : index
    %c0_12 = arith.constant 0 : index
    %c0_13 = arith.constant 0 : index
    %8 = vector.load %arg5[%c0_11, %c0_12, %c0_13] : memref<1x1x512xf32, #tpu.memory_space<vmem>>, vector<1x1x512xf32>
    %9 = vector.shape_cast %8 : vector<1x1x512xf32> to vector<1x512xf32>
    %c0_14 = arith.constant 0 : index
    %c0_15 = arith.constant 0 : index
    %c0_16 = arith.constant 0 : index
    %10 = vector.load %arg6[%c0_14, %c0_15, %c0_16] : memref<1x1x256xf32, #tpu.memory_space<vmem>>, vector<1x1x256xf32>
    %11 = vector.shape_cast %10 : vector<1x1x256xf32> to vector<1x256xf32>
    %c0_17 = arith.constant 0 : index
    %c0_18 = arith.constant 0 : index
    %c0_19 = arith.constant 0 : index
    %12 = vector.load %arg7[%c0_17, %c0_18, %c0_19] : memref<1x1x256xf32, #tpu.memory_space<vmem>>, vector<1x1x256xf32>
    %13 = vector.shape_cast %12 : vector<1x1x256xf32> to vector<1x256xf32>
    %c0_20 = arith.constant 0 : index
    %c0_21 = arith.constant 0 : index
    %c0_22 = arith.constant 0 : index
    %14 = vector.load %arg8[%c0_20, %c0_21, %c0_22] : memref<1x1x256xf32, #tpu.memory_space<vmem>>, vector<1x1x256xf32>
    %15 = vector.shape_cast %14 : vector<1x1x256xf32> to vector<1x256xf32>
    %c0_23 = arith.constant 0 : index
    %c0_24 = arith.constant 0 : index
    %c0_25 = arith.constant 0 : index
    %16 = vector.load %arg9[%c0_23, %c0_24, %c0_25] : memref<1x1x256xf32, #tpu.memory_space<vmem>>, vector<1x1x256xf32>
    %17 = vector.shape_cast %16 : vector<1x1x256xf32> to vector<1x256xf32>
    %18 = tpu.iota {dimensions = array<i32: 0>} : vector<8x8xi32>
    %19 = tpu.iota {dimensions = array<i32: 1>} : vector<8x8xi32>
    %20 = vector.extract_strided_slice %7 {offsets = [3, 0], sizes = [1, 512], strides = [1, 1]} : vector<4x512xf32> to vector<1x512xf32>
    %21 = vector.broadcast %20 : vector<1x512xf32> to vector<8x512xf32>
    %22 = arith.mulf %3, %21 : vector<8x512xf32>
    %23 = arith.subi %18, %19 : vector<8x8xi32>
    %c1_i32 = arith.constant 1 : i32
    %24 = vector.broadcast %c1_i32 : i32 to vector<8x8xi32>
    %25 = arith.cmpi eq, %23, %24 : vector<8x8xi32>
    %26 = arith.extui %25 : vector<8x8xi1> to vector<8x8xi32>
    %27 = arith.sitofp %26 : vector<8x8xi32> to vector<8x8xf32>
    %cst = arith.constant dense<0.000000e+00> : vector<8x512xf32>
    %28 = tpu.matmul %27, %3, %cst {dimension_numbers = #tpu.dot_dimension_numbers<[1], [0], [0], [1], [0, 0, 1, 1], [], []>} : vector<8x8xf32>, vector<8x512xf32>, vector<8x512xf32> -> vector<8x512xf32>
    %29 = vector.extract_strided_slice %7 {offsets = [2, 0], sizes = [1, 512], strides = [1, 1]} : vector<4x512xf32> to vector<1x512xf32>
    %30 = vector.broadcast %29 : vector<1x512xf32> to vector<8x512xf32>
    %31 = arith.mulf %28, %30 : vector<8x512xf32>
    %32 = arith.addf %22, %31 : vector<8x512xf32>
    %33 = arith.subi %18, %19 : vector<8x8xi32>
    %c2_i32 = arith.constant 2 : i32
    %34 = vector.broadcast %c2_i32 : i32 to vector<8x8xi32>
    %35 = arith.cmpi eq, %33, %34 : vector<8x8xi32>
    %36 = arith.extui %35 : vector<8x8xi1> to vector<8x8xi32>
    %37 = arith.sitofp %36 : vector<8x8xi32> to vector<8x8xf32>
    %cst_26 = arith.constant dense<0.000000e+00> : vector<8x512xf32>
    %38 = tpu.matmul %37, %3, %cst_26 {dimension_numbers = #tpu.dot_dimension_numbers<[1], [0], [0], [1], [0, 0, 1, 1], [], []>} : vector<8x8xf32>, vector<8x512xf32>, vector<8x512xf32> -> vector<8x512xf32>
    %39 = vector.extract_strided_slice %7 {offsets = [1, 0], sizes = [1, 512], strides = [1, 1]} : vector<4x512xf32> to vector<1x512xf32>
    %40 = vector.broadcast %39 : vector<1x512xf32> to vector<8x512xf32>
    %41 = arith.mulf %38, %40 : vector<8x512xf32>
    %42 = arith.addf %32, %41 : vector<8x512xf32>
    %43 = arith.subi %18, %19 : vector<8x8xi32>
    %c3_i32 = arith.constant 3 : i32
    %44 = vector.broadcast %c3_i32 : i32 to vector<8x8xi32>
    %45 = arith.cmpi eq, %43, %44 : vector<8x8xi32>
    %46 = arith.extui %45 : vector<8x8xi1> to vector<8x8xi32>
    %47 = arith.sitofp %46 : vector<8x8xi32> to vector<8x8xf32>
    %cst_27 = arith.constant dense<0.000000e+00> : vector<8x512xf32>
    %48 = tpu.matmul %47, %3, %cst_27 {dimension_numbers = #tpu.dot_dimension_numbers<[1], [0], [0], [1], [0, 0, 1, 1], [], []>} : vector<8x8xf32>, vector<8x512xf32>, vector<8x512xf32> -> vector<8x512xf32>
    %49 = vector.extract_strided_slice %7 {offsets = [0, 0], sizes = [1, 512], strides = [1, 1]} : vector<4x512xf32> to vector<1x512xf32>
    %50 = vector.broadcast %49 : vector<1x512xf32> to vector<8x512xf32>
    %51 = arith.mulf %48, %50 : vector<8x512xf32>
    %52 = arith.addf %42, %51 : vector<8x512xf32>
    %53 = vector.broadcast %9 : vector<1x512xf32> to vector<8x512xf32>
    %54 = arith.addf %52, %53 : vector<8x512xf32>
    %55 = arith.negf %54 : vector<8x512xf32>
    %56 = math.exp %55 : vector<8x512xf32>
    %cst_28 = arith.constant 1.000000e+00 : f32
    %57 = vector.broadcast %cst_28 : f32 to vector<8x512xf32>
    %58 = arith.addf %57, %56 : vector<8x512xf32>
    %59 = arith.divf %57, %58 : vector<8x512xf32>
    %60 = arith.mulf %54, %59 : vector<8x512xf32>
    %61 = vector.extract_strided_slice %60 {offsets = [0, 0], sizes = [8, 256], strides = [1, 1]} : vector<8x512xf32> to vector<8x256xf32>
    %62 = vector.extract_strided_slice %60 {offsets = [0, 256], sizes = [8, 128], strides = [1, 1]} : vector<8x512xf32> to vector<8x128xf32>
    %63 = vector.extract_strided_slice %60 {offsets = [0, 384], sizes = [8, 128], strides = [1, 1]} : vector<8x512xf32> to vector<8x128xf32>
    %64 = vector.broadcast %15 : vector<1x256xf32> to vector<8x256xf32>
    %65 = arith.addf %5, %64 : vector<8x256xf32>
    %cst_29 = arith.constant 0.000000e+00 : f32
    %66 = vector.broadcast %cst_29 : f32 to vector<8x256xf32>
    %67 = arith.maximumf %65, %66 : vector<8x256xf32>
    %68 = vector.broadcast %cst_29 : f32 to vector<8x256xf32>
    %69 = arith.subf %65, %68 : vector<8x256xf32>
    %70 = arith.cmpf one, %69, %69 : vector<8x256xf32>
    %71 = vector.broadcast %cst_29 : f32 to vector<8x256xf32>
    %72 = arith.addf %65, %71 : vector<8x256xf32>
    %73 = math.absf %69 : vector<8x256xf32>
    %cst_30 = arith.constant 0.000000e+00 : f32
    %74 = vector.broadcast %cst_30 : f32 to vector<8x256xf32>
    %75 = arith.subf %74, %73 : vector<8x256xf32>
    %76 = math.exp %75 : vector<8x256xf32>
    %77 = math.log1p %76 : vector<8x256xf32>
    %78 = arith.addf %67, %77 : vector<8x256xf32>
    %79 = arith.select %70, %72, %78 : vector<8x256xi1>, vector<8x256xf32>
    %80 = vector.broadcast %11 : vector<1x256xf32> to vector<8x256xf32>
    %81 = arith.mulf %79, %80 : vector<8x256xf32>
    %82 = arith.cmpi sge, %18, %19 : vector<8x8xi32>
    %83 = arith.extui %82 : vector<8x8xi1> to vector<8x8xi32>
    %84 = arith.sitofp %83 : vector<8x8xi32> to vector<8x8xf32>
    %cst_31 = arith.constant dense<0.000000e+00> : vector<8x256xf32>
    %85 = tpu.matmul %84, %81, %cst_31 {dimension_numbers = #tpu.dot_dimension_numbers<[1], [0], [0], [1], [0, 0, 1, 1], [], []>} : vector<8x8xf32>, vector<8x256xf32>, vector<8x256xf32> -> vector<8x256xf32>
    %86 = arith.mulf %79, %61 : vector<8x256xf32>
    %87 = vector.broadcast %13 : vector<1x256xf32> to vector<8x256xf32>
    %88 = arith.mulf %87, %61 : vector<8x256xf32>
    %89 = tpu.iota {dimensions = array<i32: 0>} : vector<128x256xi32>
    %90 = tpu.iota {dimensions = array<i32: 1>} : vector<128x256xi32>
    %c16_i32 = arith.constant 16 : i32
    %c0_i32 = arith.constant 0 : i32
    %91 = arith.cmpi eq, %c16_i32, %c0_i32 : i32
    %c1_i32_32 = arith.constant 1 : i32
    %92 = arith.select %91, %c1_i32_32, %c16_i32 : i32
    %93 = vector.broadcast %92 : i32 to vector<128x256xi32>
    %94 = arith.remsi %89, %93 : vector<128x256xi32>
    %c0_i32_33 = arith.constant 0 : i32
    %95 = vector.broadcast %c0_i32_33 : i32 to vector<128x256xi32>
    %96 = arith.cmpi ne, %94, %95 : vector<128x256xi32>
    %c0_i32_34 = arith.constant 0 : i32
    %97 = vector.broadcast %c0_i32_34 : i32 to vector<128x256xi32>
    %98 = arith.cmpi slt, %94, %97 : vector<128x256xi32>
    %c0_i32_35 = arith.constant 0 : i32
    %99 = arith.cmpi slt, %92, %c0_i32_35 : i32
    %100 = vector.broadcast %99 : i1 to vector<128x256xi1>
    %101 = vector.broadcast %100 : vector<128x256xi1> to vector<128x256xi1>
    %102 = arith.xori %98, %101 : vector<128x256xi1>
    %103 = arith.andi %102, %96 : vector<128x256xi1>
    %104 = vector.broadcast %92 : i32 to vector<128x256xi32>
    %105 = arith.addi %94, %104 : vector<128x256xi32>
    %106 = arith.select %103, %105, %94 : vector<128x256xi1>, vector<128x256xi32>
    %c16_i32_36 = arith.constant 16 : i32
    %c0_i32_37 = arith.constant 0 : i32
    %107 = arith.cmpi eq, %c16_i32_36, %c0_i32_37 : i32
    %c1_i32_38 = arith.constant 1 : i32
    %108 = arith.select %107, %c1_i32_38, %c16_i32_36 : i32
    %109 = vector.broadcast %108 : i32 to vector<128x256xi32>
    %110 = arith.remsi %90, %109 : vector<128x256xi32>
    %c0_i32_39 = arith.constant 0 : i32
    %111 = vector.broadcast %c0_i32_39 : i32 to vector<128x256xi32>
    %112 = arith.cmpi ne, %110, %111 : vector<128x256xi32>
    %c0_i32_40 = arith.constant 0 : i32
    %113 = vector.broadcast %c0_i32_40 : i32 to vector<128x256xi32>
    %114 = arith.cmpi slt, %110, %113 : vector<128x256xi32>
    %c0_i32_41 = arith.constant 0 : i32
    %115 = arith.cmpi slt, %108, %c0_i32_41 : i32
    %116 = vector.broadcast %115 : i1 to vector<128x256xi1>
    %117 = vector.broadcast %116 : vector<128x256xi1> to vector<128x256xi1>
    %118 = arith.xori %114, %117 : vector<128x256xi1>
    %119 = arith.andi %118, %112 : vector<128x256xi1>
    %120 = vector.broadcast %108 : i32 to vector<128x256xi32>
    %121 = arith.addi %110, %120 : vector<128x256xi32>
    %122 = arith.select %119, %121, %110 : vector<128x256xi1>, vector<128x256xi32>
    %123 = arith.cmpi eq, %106, %122 : vector<128x256xi32>
    %124 = arith.extui %123 : vector<128x256xi1> to vector<128x256xi32>
    %125 = arith.sitofp %124 : vector<128x256xi32> to vector<128x256xf32>
    %126 = arith.mulf %63, %62 : vector<8x128xf32>
    %cst_42 = arith.constant dense<0.000000e+00> : vector<8x256xf32>
    %127 = tpu.matmul %126, %125, %cst_42 {dimension_numbers = #tpu.dot_dimension_numbers<[1], [0], [0], [1], [0, 0, 1, 1], [], []>} : vector<8x128xf32>, vector<128x256xf32>, vector<8x256xf32> -> vector<8x256xf32>
    %128 = arith.subf %85, %85 : vector<8x256xf32>
    %129 = math.exp %128 : vector<8x256xf32>
    %130 = arith.mulf %127, %129 : vector<8x256xf32>
    %131 = arith.mulf %130, %86 : vector<8x256xf32>
    %132 = arith.addf %88, %131 : vector<8x256xf32>
    %133 = arith.subi %18, %19 : vector<8x8xi32>
    %c1_i32_43 = arith.constant 1 : i32
    %134 = vector.broadcast %c1_i32_43 : i32 to vector<8x8xi32>
    %135 = arith.cmpi eq, %133, %134 : vector<8x8xi32>
    %136 = arith.extui %135 : vector<8x8xi1> to vector<8x8xi32>
    %137 = arith.sitofp %136 : vector<8x8xi32> to vector<8x8xf32>
    %cst_44 = arith.constant dense<0.000000e+00> : vector<8x128xf32>
    %138 = tpu.matmul %137, %62, %cst_44 {dimension_numbers = #tpu.dot_dimension_numbers<[1], [0], [0], [1], [0, 0, 1, 1], [], []>} : vector<8x8xf32>, vector<8x128xf32>, vector<8x128xf32> -> vector<8x128xf32>
    %cst_45 = arith.constant dense<0.000000e+00> : vector<8x256xf32>
    %139 = tpu.matmul %137, %85, %cst_45 {dimension_numbers = #tpu.dot_dimension_numbers<[1], [0], [0], [1], [0, 0, 1, 1], [], []>} : vector<8x8xf32>, vector<8x256xf32>, vector<8x256xf32> -> vector<8x256xf32>
    %cst_46 = arith.constant dense<0.000000e+00> : vector<8x256xf32>
    %140 = tpu.matmul %137, %86, %cst_46 {dimension_numbers = #tpu.dot_dimension_numbers<[1], [0], [0], [1], [0, 0, 1, 1], [], []>} : vector<8x8xf32>, vector<8x256xf32>, vector<8x256xf32> -> vector<8x256xf32>
    %141 = arith.mulf %63, %138 : vector<8x128xf32>
    %cst_47 = arith.constant dense<0.000000e+00> : vector<8x256xf32>
    %142 = tpu.matmul %141, %125, %cst_47 {dimension_numbers = #tpu.dot_dimension_numbers<[1], [0], [0], [1], [0, 0, 1, 1], [], []>} : vector<8x128xf32>, vector<128x256xf32>, vector<8x256xf32> -> vector<8x256xf32>
    %143 = arith.subf %85, %139 : vector<8x256xf32>
    %144 = math.exp %143 : vector<8x256xf32>
    %145 = arith.mulf %142, %144 : vector<8x256xf32>
    %146 = arith.mulf %145, %140 : vector<8x256xf32>
    %147 = arith.addf %132, %146 : vector<8x256xf32>
    %148 = arith.subi %18, %19 : vector<8x8xi32>
    %c2_i32_48 = arith.constant 2 : i32
    %149 = vector.broadcast %c2_i32_48 : i32 to vector<8x8xi32>
    %150 = arith.cmpi eq, %148, %149 : vector<8x8xi32>
    %151 = arith.extui %150 : vector<8x8xi1> to vector<8x8xi32>
    %152 = arith.sitofp %151 : vector<8x8xi32> to vector<8x8xf32>
    %cst_49 = arith.constant dense<0.000000e+00> : vector<8x128xf32>
    %153 = tpu.matmul %152, %62, %cst_49 {dimension_numbers = #tpu.dot_dimension_numbers<[1], [0], [0], [1], [0, 0, 1, 1], [], []>} : vector<8x8xf32>, vector<8x128xf32>, vector<8x128xf32> -> vector<8x128xf32>
    %cst_50 = arith.constant dense<0.000000e+00> : vector<8x256xf32>
    %154 = tpu.matmul %152, %85, %cst_50 {dimension_numbers = #tpu.dot_dimension_numbers<[1], [0], [0], [1], [0, 0, 1, 1], [], []>} : vector<8x8xf32>, vector<8x256xf32>, vector<8x256xf32> -> vector<8x256xf32>
    %cst_51 = arith.constant dense<0.000000e+00> : vector<8x256xf32>
    %155 = tpu.matmul %152, %86, %cst_51 {dimension_numbers = #tpu.dot_dimension_numbers<[1], [0], [0], [1], [0, 0, 1, 1], [], []>} : vector<8x8xf32>, vector<8x256xf32>, vector<8x256xf32> -> vector<8x256xf32>
    %156 = arith.mulf %63, %153 : vector<8x128xf32>
    %cst_52 = arith.constant dense<0.000000e+00> : vector<8x256xf32>
    %157 = tpu.matmul %156, %125, %cst_52 {dimension_numbers = #tpu.dot_dimension_numbers<[1], [0], [0], [1], [0, 0, 1, 1], [], []>} : vector<8x128xf32>, vector<128x256xf32>, vector<8x256xf32> -> vector<8x256xf32>
    %158 = arith.subf %85, %154 : vector<8x256xf32>
    %159 = math.exp %158 : vector<8x256xf32>
    %160 = arith.mulf %157, %159 : vector<8x256xf32>
    %161 = arith.mulf %160, %155 : vector<8x256xf32>
    %162 = arith.addf %147, %161 : vector<8x256xf32>
    %163 = arith.subi %18, %19 : vector<8x8xi32>
    %c3_i32_53 = arith.constant 3 : i32
    %164 = vector.broadcast %c3_i32_53 : i32 to vector<8x8xi32>
    %165 = arith.cmpi eq, %163, %164 : vector<8x8xi32>
    %166 = arith.extui %165 : vector<8x8xi1> to vector<8x8xi32>
    %167 = arith.sitofp %166 : vector<8x8xi32> to vector<8x8xf32>
    %cst_54 = arith.constant dense<0.000000e+00> : vector<8x128xf32>
    %168 = tpu.matmul %167, %62, %cst_54 {dimension_numbers = #tpu.dot_dimension_numbers<[1], [0], [0], [1], [0, 0, 1, 1], [], []>} : vector<8x8xf32>, vector<8x128xf32>, vector<8x128xf32> -> vector<8x128xf32>
    %cst_55 = arith.constant dense<0.000000e+00> : vector<8x256xf32>
    %169 = tpu.matmul %167, %85, %cst_55 {dimension_numbers = #tpu.dot_dimension_numbers<[1], [0], [0], [1], [0, 0, 1, 1], [], []>} : vector<8x8xf32>, vector<8x256xf32>, vector<8x256xf32> -> vector<8x256xf32>
    %cst_56 = arith.constant dense<0.000000e+00> : vector<8x256xf32>
    %170 = tpu.matmul %167, %86, %cst_56 {dimension_numbers = #tpu.dot_dimension_numbers<[1], [0], [0], [1], [0, 0, 1, 1], [], []>} : vector<8x8xf32>, vector<8x256xf32>, vector<8x256xf32> -> vector<8x256xf32>
    %171 = arith.mulf %63, %168 : vector<8x128xf32>
    %cst_57 = arith.constant dense<0.000000e+00> : vector<8x256xf32>
    %172 = tpu.matmul %171, %125, %cst_57 {dimension_numbers = #tpu.dot_dimension_numbers<[1], [0], [0], [1], [0, 0, 1, 1], [], []>} : vector<8x128xf32>, vector<128x256xf32>, vector<8x256xf32> -> vector<8x256xf32>
    %173 = arith.subf %85, %169 : vector<8x256xf32>
    %174 = math.exp %173 : vector<8x256xf32>
    %175 = arith.mulf %172, %174 : vector<8x256xf32>
    %176 = arith.mulf %175, %170 : vector<8x256xf32>
    %177 = arith.addf %162, %176 : vector<8x256xf32>
    %178 = arith.subi %18, %19 : vector<8x8xi32>
    %c4_i32 = arith.constant 4 : i32
    %179 = vector.broadcast %c4_i32 : i32 to vector<8x8xi32>
    %180 = arith.cmpi eq, %178, %179 : vector<8x8xi32>
    %181 = arith.extui %180 : vector<8x8xi1> to vector<8x8xi32>
    %182 = arith.sitofp %181 : vector<8x8xi32> to vector<8x8xf32>
    %cst_58 = arith.constant dense<0.000000e+00> : vector<8x128xf32>
    %183 = tpu.matmul %182, %62, %cst_58 {dimension_numbers = #tpu.dot_dimension_numbers<[1], [0], [0], [1], [0, 0, 1, 1], [], []>} : vector<8x8xf32>, vector<8x128xf32>, vector<8x128xf32> -> vector<8x128xf32>
    %cst_59 = arith.constant dense<0.000000e+00> : vector<8x256xf32>
    %184 = tpu.matmul %182, %85, %cst_59 {dimension_numbers = #tpu.dot_dimension_numbers<[1], [0], [0], [1], [0, 0, 1, 1], [], []>} : vector<8x8xf32>, vector<8x256xf32>, vector<8x256xf32> -> vector<8x256xf32>
    %cst_60 = arith.constant dense<0.000000e+00> : vector<8x256xf32>
    %185 = tpu.matmul %182, %86, %cst_60 {dimension_numbers = #tpu.dot_dimension_numbers<[1], [0], [0], [1], [0, 0, 1, 1], [], []>} : vector<8x8xf32>, vector<8x256xf32>, vector<8x256xf32> -> vector<8x256xf32>
    %186 = arith.mulf %63, %183 : vector<8x128xf32>
    %cst_61 = arith.constant dense<0.000000e+00> : vector<8x256xf32>
    %187 = tpu.matmul %186, %125, %cst_61 {dimension_numbers = #tpu.dot_dimension_numbers<[1], [0], [0], [1], [0, 0, 1, 1], [], []>} : vector<8x128xf32>, vector<128x256xf32>, vector<8x256xf32> -> vector<8x256xf32>
    %188 = arith.subf %85, %184 : vector<8x256xf32>
    %189 = math.exp %188 : vector<8x256xf32>
    %190 = arith.mulf %187, %189 : vector<8x256xf32>
    %191 = arith.mulf %190, %185 : vector<8x256xf32>
    %192 = arith.addf %177, %191 : vector<8x256xf32>
    %193 = arith.subi %18, %19 : vector<8x8xi32>
    %c5_i32 = arith.constant 5 : i32
    %194 = vector.broadcast %c5_i32 : i32 to vector<8x8xi32>
    %195 = arith.cmpi eq, %193, %194 : vector<8x8xi32>
    %196 = arith.extui %195 : vector<8x8xi1> to vector<8x8xi32>
    %197 = arith.sitofp %196 : vector<8x8xi32> to vector<8x8xf32>
    %cst_62 = arith.constant dense<0.000000e+00> : vector<8x128xf32>
    %198 = tpu.matmul %197, %62, %cst_62 {dimension_numbers = #tpu.dot_dimension_numbers<[1], [0], [0], [1], [0, 0, 1, 1], [], []>} : vector<8x8xf32>, vector<8x128xf32>, vector<8x128xf32> -> vector<8x128xf32>
    %cst_63 = arith.constant dense<0.000000e+00> : vector<8x256xf32>
    %199 = tpu.matmul %197, %85, %cst_63 {dimension_numbers = #tpu.dot_dimension_numbers<[1], [0], [0], [1], [0, 0, 1, 1], [], []>} : vector<8x8xf32>, vector<8x256xf32>, vector<8x256xf32> -> vector<8x256xf32>
    %cst_64 = arith.constant dense<0.000000e+00> : vector<8x256xf32>
    %200 = tpu.matmul %197, %86, %cst_64 {dimension_numbers = #tpu.dot_dimension_numbers<[1], [0], [0], [1], [0, 0, 1, 1], [], []>} : vector<8x8xf32>, vector<8x256xf32>, vector<8x256xf32> -> vector<8x256xf32>
    %201 = arith.mulf %63, %198 : vector<8x128xf32>
    %cst_65 = arith.constant dense<0.000000e+00> : vector<8x256xf32>
    %202 = tpu.matmul %201, %125, %cst_65 {dimension_numbers = #tpu.dot_dimension_numbers<[1], [0], [0], [1], [0, 0, 1, 1], [], []>} : vector<8x128xf32>, vector<128x256xf32>, vector<8x256xf32> -> vector<8x256xf32>
    %203 = arith.subf %85, %199 : vector<8x256xf32>
    %204 = math.exp %203 : vector<8x256xf32>
    %205 = arith.mulf %202, %204 : vector<8x256xf32>
    %206 = arith.mulf %205, %200 : vector<8x256xf32>
    %207 = arith.addf %192, %206 : vector<8x256xf32>
    %208 = arith.subi %18, %19 : vector<8x8xi32>
    %c6_i32 = arith.constant 6 : i32
    %209 = vector.broadcast %c6_i32 : i32 to vector<8x8xi32>
    %210 = arith.cmpi eq, %208, %209 : vector<8x8xi32>
    %211 = arith.extui %210 : vector<8x8xi1> to vector<8x8xi32>
    %212 = arith.sitofp %211 : vector<8x8xi32> to vector<8x8xf32>
    %cst_66 = arith.constant dense<0.000000e+00> : vector<8x128xf32>
    %213 = tpu.matmul %212, %62, %cst_66 {dimension_numbers = #tpu.dot_dimension_numbers<[1], [0], [0], [1], [0, 0, 1, 1], [], []>} : vector<8x8xf32>, vector<8x128xf32>, vector<8x128xf32> -> vector<8x128xf32>
    %cst_67 = arith.constant dense<0.000000e+00> : vector<8x256xf32>
    %214 = tpu.matmul %212, %85, %cst_67 {dimension_numbers = #tpu.dot_dimension_numbers<[1], [0], [0], [1], [0, 0, 1, 1], [], []>} : vector<8x8xf32>, vector<8x256xf32>, vector<8x256xf32> -> vector<8x256xf32>
    %cst_68 = arith.constant dense<0.000000e+00> : vector<8x256xf32>
    %215 = tpu.matmul %212, %86, %cst_68 {dimension_numbers = #tpu.dot_dimension_numbers<[1], [0], [0], [1], [0, 0, 1, 1], [], []>} : vector<8x8xf32>, vector<8x256xf32>, vector<8x256xf32> -> vector<8x256xf32>
    %216 = arith.mulf %63, %213 : vector<8x128xf32>
    %cst_69 = arith.constant dense<0.000000e+00> : vector<8x256xf32>
    %217 = tpu.matmul %216, %125, %cst_69 {dimension_numbers = #tpu.dot_dimension_numbers<[1], [0], [0], [1], [0, 0, 1, 1], [], []>} : vector<8x128xf32>, vector<128x256xf32>, vector<8x256xf32> -> vector<8x256xf32>
    %218 = arith.subf %85, %214 : vector<8x256xf32>
    %219 = math.exp %218 : vector<8x256xf32>
    %220 = arith.mulf %217, %219 : vector<8x256xf32>
    %221 = arith.mulf %220, %215 : vector<8x256xf32>
    %222 = arith.addf %207, %221 : vector<8x256xf32>
    %223 = arith.subi %18, %19 : vector<8x8xi32>
    %c7_i32 = arith.constant 7 : i32
    %224 = vector.broadcast %c7_i32 : i32 to vector<8x8xi32>
    %225 = arith.cmpi eq, %223, %224 : vector<8x8xi32>
    %226 = arith.extui %225 : vector<8x8xi1> to vector<8x8xi32>
    %227 = arith.sitofp %226 : vector<8x8xi32> to vector<8x8xf32>
    %cst_70 = arith.constant dense<0.000000e+00> : vector<8x128xf32>
    %228 = tpu.matmul %227, %62, %cst_70 {dimension_numbers = #tpu.dot_dimension_numbers<[1], [0], [0], [1], [0, 0, 1, 1], [], []>} : vector<8x8xf32>, vector<8x128xf32>, vector<8x128xf32> -> vector<8x128xf32>
    %cst_71 = arith.constant dense<0.000000e+00> : vector<8x256xf32>
    %229 = tpu.matmul %227, %85, %cst_71 {dimension_numbers = #tpu.dot_dimension_numbers<[1], [0], [0], [1], [0, 0, 1, 1], [], []>} : vector<8x8xf32>, vector<8x256xf32>, vector<8x256xf32> -> vector<8x256xf32>
    %cst_72 = arith.constant dense<0.000000e+00> : vector<8x256xf32>
    %230 = tpu.matmul %227, %86, %cst_72 {dimension_numbers = #tpu.dot_dimension_numbers<[1], [0], [0], [1], [0, 0, 1, 1], [], []>} : vector<8x8xf32>, vector<8x256xf32>, vector<8x256xf32> -> vector<8x256xf32>
    %231 = arith.mulf %63, %228 : vector<8x128xf32>
    %cst_73 = arith.constant dense<0.000000e+00> : vector<8x256xf32>
    %232 = tpu.matmul %231, %125, %cst_73 {dimension_numbers = #tpu.dot_dimension_numbers<[1], [0], [0], [1], [0, 0, 1, 1], [], []>} : vector<8x128xf32>, vector<128x256xf32>, vector<8x256xf32> -> vector<8x256xf32>
    %233 = arith.subf %85, %229 : vector<8x256xf32>
    %234 = math.exp %233 : vector<8x256xf32>
    %235 = arith.mulf %232, %234 : vector<8x256xf32>
    %236 = arith.mulf %235, %230 : vector<8x256xf32>
    %237 = arith.addf %222, %236 : vector<8x256xf32>
    %238 = arith.negf %1 : vector<8x256xf32>
    %239 = math.exp %238 : vector<8x256xf32>
    %cst_74 = arith.constant 1.000000e+00 : f32
    %240 = vector.broadcast %cst_74 : f32 to vector<8x256xf32>
    %241 = arith.addf %240, %239 : vector<8x256xf32>
    %242 = arith.divf %240, %241 : vector<8x256xf32>
    %243 = arith.mulf %1, %242 : vector<8x256xf32>
    %244 = arith.mulf %237, %243 : vector<8x256xf32>
    %245 = tpu.iota {dimensions = array<i32: 0>} : vector<256x256xi32>
    %246 = tpu.iota {dimensions = array<i32: 1>} : vector<256x256xi32>
    %c16_i32_75 = arith.constant 16 : i32
    %c0_i32_76 = arith.constant 0 : i32
    %247 = arith.cmpi eq, %c16_i32_75, %c0_i32_76 : i32
    %c1_i32_77 = arith.constant 1 : i32
    %248 = arith.select %247, %c1_i32_77, %c16_i32_75 : i32
    %249 = vector.broadcast %248 : i32 to vector<256x256xi32>
    %250 = arith.remsi %245, %249 : vector<256x256xi32>
    %c0_i32_78 = arith.constant 0 : i32
    %251 = vector.broadcast %c0_i32_78 : i32 to vector<256x256xi32>
    %252 = arith.cmpi ne, %250, %251 : vector<256x256xi32>
    %c0_i32_79 = arith.constant 0 : i32
    %253 = vector.broadcast %c0_i32_79 : i32 to vector<256x256xi32>
    %254 = arith.cmpi slt, %250, %253 : vector<256x256xi32>
    %c0_i32_80 = arith.constant 0 : i32
    %255 = arith.cmpi slt, %248, %c0_i32_80 : i32
    %256 = vector.broadcast %255 : i1 to vector<256x256xi1>
    %257 = vector.broadcast %256 : vector<256x256xi1> to vector<256x256xi1>
    %258 = arith.xori %254, %257 : vector<256x256xi1>
    %259 = arith.andi %258, %252 : vector<256x256xi1>
    %260 = vector.broadcast %248 : i32 to vector<256x256xi32>
    %261 = arith.addi %250, %260 : vector<256x256xi32>
    %262 = arith.select %259, %261, %250 : vector<256x256xi1>, vector<256x256xi32>
    %c16_i32_81 = arith.constant 16 : i32
    %c0_i32_82 = arith.constant 0 : i32
    %263 = arith.cmpi eq, %c16_i32_81, %c0_i32_82 : i32
    %c1_i32_83 = arith.constant 1 : i32
    %264 = arith.select %263, %c1_i32_83, %c16_i32_81 : i32
    %265 = vector.broadcast %264 : i32 to vector<256x256xi32>
    %266 = arith.remsi %246, %265 : vector<256x256xi32>
    %c0_i32_84 = arith.constant 0 : i32
    %267 = vector.broadcast %c0_i32_84 : i32 to vector<256x256xi32>
    %268 = arith.cmpi ne, %266, %267 : vector<256x256xi32>
    %c0_i32_85 = arith.constant 0 : i32
    %269 = vector.broadcast %c0_i32_85 : i32 to vector<256x256xi32>
    %270 = arith.cmpi slt, %266, %269 : vector<256x256xi32>
    %c0_i32_86 = arith.constant 0 : i32
    %271 = arith.cmpi slt, %264, %c0_i32_86 : i32
    %272 = vector.broadcast %271 : i1 to vector<256x256xi1>
    %273 = vector.broadcast %272 : vector<256x256xi1> to vector<256x256xi1>
    %274 = arith.xori %270, %273 : vector<256x256xi1>
    %275 = arith.andi %274, %268 : vector<256x256xi1>
    %276 = vector.broadcast %264 : i32 to vector<256x256xi32>
    %277 = arith.addi %266, %276 : vector<256x256xi32>
    %278 = arith.select %275, %277, %266 : vector<256x256xi1>, vector<256x256xi32>
    %279 = arith.cmpi eq, %262, %278 : vector<256x256xi32>
    %280 = arith.extui %279 : vector<256x256xi1> to vector<256x256xi32>
    %281 = arith.sitofp %280 : vector<256x256xi32> to vector<256x256xf32>
    %282 = arith.mulf %244, %244 : vector<8x256xf32>
    %cst_87 = arith.constant dense<0.000000e+00> : vector<8x256xf32>
    %283 = tpu.matmul %282, %281, %cst_87 {dimension_numbers = #tpu.dot_dimension_numbers<[1], [0], [0], [1], [0, 0, 1, 1], [], []>} : vector<8x256xf32>, vector<256x256xf32>, vector<8x256xf32> -> vector<8x256xf32>
    %cst_88 = arith.constant 6.250000e-02 : f32
    %284 = vector.broadcast %cst_88 : f32 to vector<8x256xf32>
    %285 = arith.mulf %283, %284 : vector<8x256xf32>
    %cst_89 = arith.constant 9.99999974E-6 : f32
    %286 = vector.broadcast %cst_89 : f32 to vector<8x256xf32>
    %287 = arith.addf %285, %286 : vector<8x256xf32>
    %288 = math.rsqrt %287 : vector<8x256xf32>
    %289 = arith.mulf %244, %288 : vector<8x256xf32>
    %290 = vector.broadcast %17 : vector<1x256xf32> to vector<8x256xf32>
    %291 = arith.mulf %289, %290 : vector<8x256xf32>
    %c0_90 = arith.constant 0 : index
    %c0_91 = arith.constant 0 : index
    %292 = vector.load %arg10[%c0_90, %c0_91] : memref<8x256xf32, #tpu.memory_space<vmem>>, vector<8x256xf32>
    tpu.vector_store %arg10[%c0_90, %c0_91], %291 {strides = array<i32>} : memref<8x256xf32, #tpu.memory_space<vmem>>, vector<8x256xf32>,
    return
  }
  func.func @transform_0(%arg0: i32) -> (i32, i32, i32) {
    %c0_i32 = arith.constant 0 : i32
    %c0_i32_0 = arith.constant 0 : i32
    %c0_i32_1 = arith.constant 0 : i32
    return %arg0, %c0_i32, %c0_i32_0 : i32, i32, i32
  }
  func.func @transform_1(%arg0: i32) -> (i32, i32, i32) {
    %c0_i32 = arith.constant 0 : i32
    %c0_i32_0 = arith.constant 0 : i32
    %c0_i32_1 = arith.constant 0 : i32
    return %arg0, %c0_i32, %c0_i32_0 : i32, i32, i32
  }
  func.func @transform_2(%arg0: i32) -> (i32, i32, i32) {
    %c0_i32 = arith.constant 0 : i32
    %c0_i32_0 = arith.constant 0 : i32
    %c0_i32_1 = arith.constant 0 : i32
    return %arg0, %c0_i32, %c0_i32_0 : i32, i32, i32
  }
  func.func @transform_3(%arg0: i32) -> (i32, i32, i32) {
    %c0_i32 = arith.constant 0 : i32
    %c0_i32_0 = arith.constant 0 : i32
    %c0_i32_1 = arith.constant 0 : i32
    return %arg0, %c0_i32, %c0_i32_0 : i32, i32, i32
  }
  func.func @transform_4(%arg0: i32) -> (i32, i32, i32) {
    %c0_i32 = arith.constant 0 : i32
    %c0_i32_0 = arith.constant 0 : i32
    %c0_i32_1 = arith.constant 0 : i32
    return %arg0, %c0_i32, %c0_i32_0 : i32, i32, i32
  }
  func.func @transform_5(%arg0: i32) -> (i32, i32, i32) {
    %c0_i32 = arith.constant 0 : i32
    %c0_i32_0 = arith.constant 0 : i32
    %c0_i32_1 = arith.constant 0 : i32
    return %arg0, %c0_i32, %c0_i32_0 : i32, i32, i32
  }
  func.func @transform_6(%arg0: i32) -> (i32, i32, i32) {
    %c0_i32 = arith.constant 0 : i32
    %c0_i32_0 = arith.constant 0 : i32
    %c0_i32_1 = arith.constant 0 : i32
    return %arg0, %c0_i32, %c0_i32_0 : i32, i32, i32
  }
  func.func @transform_7(%arg0: i32) -> (i32, i32, i32) {
    %c0_i32 = arith.constant 0 : i32
    %c0_i32_0 = arith.constant 0 : i32
    %c0_i32_1 = arith.constant 0 : i32
    return %arg0, %c0_i32, %c0_i32_0 : i32, i32, i32
  }
  func.func @transform_8(%arg0: i32) -> (i32, i32, i32) {
    %c0_i32 = arith.constant 0 : i32
    %c0_i32_0 = arith.constant 0 : i32
    %c0_i32_1 = arith.constant 0 : i32
    return %arg0, %c0_i32, %c0_i32_0 : i32, i32, i32
  }
  func.func @transform_9(%arg0: i32) -> (i32, i32) {
    %c0_i32 = arith.constant 0 : i32
    %c0_i32_0 = arith.constant 0 : i32
    return %c0_i32, %arg0 : i32, i32
  }
}

module attributes {stable_mosaic.version = 11 : i64} {
  func.func @_matmul_bias_kernel(%arg0: i32, %arg1: memref<128x176xf32, #tpu.memory_space<vmem>>, %arg2: memref<176x4xf32, #tpu.memory_space<vmem>>, %arg3: memref<1x4xf32, #tpu.memory_space<vmem>>, %arg4: memref<128x4xf32, #tpu.memory_space<vmem>>) attributes {dimension_semantics = [#tpu.dimension_semantics<arbitrary>], iteration_bounds = array<i64: 1>, scalar_prefetch = 0 : i64, scratch_operands = 0 : i64, tpu.core_type = #tpu.core_type<tc>, window_params = [{pipeline_mode = #tpu.pipeline_mode<synchronous>, transform_indices = @transform_0, window_bounds = array<i64: 128, 176>}, {pipeline_mode = #tpu.pipeline_mode<synchronous>, transform_indices = @transform_1, window_bounds = array<i64: 176, 4>}, {pipeline_mode = #tpu.pipeline_mode<synchronous>, transform_indices = @transform_2, window_bounds = array<i64: 1, 4>}, {pipeline_mode = #tpu.pipeline_mode<synchronous>, transform_indices = @transform_3, window_bounds = array<i64: 128, 4>}]} {
    %c0 = arith.constant 0 : index
    %c0_0 = arith.constant 0 : index
    %0 = vector.load %arg1[%c0, %c0_0] : memref<128x176xf32, #tpu.memory_space<vmem>>, vector<128x176xf32>
    %c0_1 = arith.constant 0 : index
    %c0_2 = arith.constant 0 : index
    %1 = vector.load %arg2[%c0_1, %c0_2] : memref<176x4xf32, #tpu.memory_space<vmem>>, vector<176x4xf32>
    %cst = arith.constant dense<0.000000e+00> : vector<128x4xf32>
    %2 = tpu.matmul %0, %1, %cst {dimension_numbers = #tpu.dot_dimension_numbers<[1], [0], [0], [1], [0, 0, 1, 1], [], []>} : vector<128x176xf32>, vector<176x4xf32>, vector<128x4xf32> -> vector<128x4xf32>
    %c0_3 = arith.constant 0 : index
    %c0_4 = arith.constant 0 : index
    %3 = vector.load %arg3[%c0_3, %c0_4] : memref<1x4xf32, #tpu.memory_space<vmem>>, vector<1x4xf32>
    %4 = vector.broadcast %3 : vector<1x4xf32> to vector<128x4xf32>
    %5 = arith.addf %2, %4 : vector<128x4xf32>
    %c0_5 = arith.constant 0 : index
    %c0_6 = arith.constant 0 : index
    %6 = vector.load %arg4[%c0_5, %c0_6] : memref<128x4xf32, #tpu.memory_space<vmem>>, vector<128x4xf32>
    tpu.vector_store %arg4[%c0_5, %c0_6], %5 {strides = array<i32>} : memref<128x4xf32, #tpu.memory_space<vmem>>, vector<128x4xf32>,
    return
  }
  func.func @transform_0(%arg0: i32) -> (i32, i32) {
    %c0_i32 = arith.constant 0 : i32
    %c0_i32_0 = arith.constant 0 : i32
    %c0_i32_1 = arith.constant 0 : i32
    return %c0_i32, %c0_i32_0 : i32, i32
  }
  func.func @transform_1(%arg0: i32) -> (i32, i32) {
    %c0_i32 = arith.constant 0 : i32
    %c0_i32_0 = arith.constant 0 : i32
    %c0_i32_1 = arith.constant 0 : i32
    return %c0_i32, %c0_i32_0 : i32, i32
  }
  func.func @transform_2(%arg0: i32) -> (i32, i32) {
    %c0_i32 = arith.constant 0 : i32
    %c0_i32_0 = arith.constant 0 : i32
    %c0_i32_1 = arith.constant 0 : i32
    return %c0_i32, %c0_i32_0 : i32, i32
  }
  func.func @transform_3(%arg0: i32) -> (i32, i32) {
    %c0_i32 = arith.constant 0 : i32
    %c0_i32_0 = arith.constant 0 : i32
    %c0_i32_1 = arith.constant 0 : i32
    return %c0_i32, %c0_i32_0 : i32, i32
  }
}

</mosaic_0001>

<bundles_post_ra>
// kernel: vim_block_forward.3
= control target key start
LH: loop header
LB: loop body
LE: loop exit
PB: predicated region body
PF: predicated region fallthrough
CT: control target
= control target key end

     0   :  { %vm42_vm0 = vcmask 293888   ;;  %vm91_vm1 = vcmask 1043456   ;;  %s497_s1 = inlined_call_operand.vmem [shape: f32[36,128], index: 1, kind: input, shape index: {}]   ;;  %s498_s0 = inlined_call_operand.vmem [shape: f32[128,36], index: 0, kind: input, shape index: {}]   ;;  %s499_s2 = inlined_call_operand.vmem [shape: f32[1,128], index: 2, kind: input, shape index: {}]   ;;  %s500_s3 = inlined_call_operand.vmem [shape: f32[128,128], index: 3, kind: output, shape index: {}]  }
   0x1   :  { %v30_v0 = vld [vmem:[%s497_s1] sm:$0xff]  ;;  %v31_v1 = vld [vmem:[%s497_s1 + $0x8] sm:$0xff]  ;;  %v32_v2 = vld [vmem:[%s497_s1 + $0x10] sm:$0xff] }
   0x2   :  { %v333_v3 = vpack.c.bf16 %v31_v1, %v30_v0  ;;  %v33_v4 = vld [vmem:[%s497_s1 + $0x18] sm:$0xff]  ;;  %v14_v5 = vld [vmem:[%s498_s0] sm:$0xff]  ;;  %v15_v9 = vld [vmem:[%s498_s0 + $0x8] sm:$0xff] }
   0x3   :  { %v337_v6 = vpack.c.bf16 %v33_v4, %v32_v2  ;;  %309 = vmatprep.mubr.msk.f32.mxu0 %vm42_vm0, %v14_v5  ;;  %v22_v7 = vld [vmem:[%s498_s0 + $0x40] sm:$0xff]  ;;  %v23_v10 = vld [vmem:[%s498_s0 + $0x48] sm:$0xff]  ;;  %v16_v11 = vld [vmem:[%s498_s0 + $0x10] sm:$0xff] }
   0x4   :  { %334 = vmatprep.subr.bf16.mxu0 %v333_v3  ;;  %341 = vmatprep.subr.bf16.mxu1 %v333_v3  ;;  %v34_v8 = vld [vmem:[%s497_s1 + $0x20] sm:$0xf]  ;;  %v24_v12 = vld [vmem:[%s498_s0 + $0x50] sm:$0xff]  ;;  %v17_v13 = vld [vmem:[%s498_s0 + $0x18] sm:$0xff] }
   0x5   :  { %336 = vmatpush3.bf16.msra.mxu0 %v333_v3  ;;  %344 = vmatpush3.bf16.msra.mxu1 %v333_v3  ;;  %v25_v14 = vld [vmem:[%s498_s0 + $0x58] sm:$0xff]  ;;  %v18_v15 = vld [vmem:[%s498_s0 + $0x20] sm:$0xff]  ;;  %v19_v17 = vld [vmem:[%s498_s0 + $0x28] sm:$0xff] }
   0x6   :  { %338 = vmatprep.subr.bf16.mxu0 %v337_v6  ;;  %342 = vmatprep.subr.bf16.mxu1 %v337_v6  ;;  %v26_v16 = vld [vmem:[%s498_s0 + $0x60] sm:$0xff]  ;;  %v27_v18 = vld [vmem:[%s498_s0 + $0x68] sm:$0xff]  ;;  %v20_v19 = vld [vmem:[%s498_s0 + $0x30] sm:$0xff] }
   0x7   :  { %321 = vmatprep.mubr.msk.f32.mxu1 %vm42_vm0, %v22_v7  ;;  %v28_v20 = vld [vmem:[%s498_s0 + $0x70] sm:$0xff]  ;;  %v21_v21 = vld [vmem:[%s498_s0 + $0x38] sm:$0xff]  ;;  %v260_v23 = vld [vmem:[%s499_s2] ss:$0 sm:$0xff] }
   0x8   :  { %v29_v22 = vld [vmem:[%s498_s0 + $0x78] sm:$0xff] }
   0x9   :  { %340 = vmatpush3.bf16.msra.mxu0 %v337_v6  ;;  %345 = vmatpush3.bf16.msra.mxu1 %v337_v6 }
   0xa   :  { %307 = vmatprep.subr.msk.mxu0 %vm91_vm1, %v34_v8  ;;  %343 = vmatprep.subr.msk.mxu1 %vm91_vm1, %v34_v8 }
   0xd   :  { %308 = vmatpush3.msk.msra.mxu0 %vm91_vm1, %v34_v8  ;;  %346 = vmatpush3.msk.msra.mxu1 %vm91_vm1, %v34_v8 }
   0xe   :  { %310 = vmatmul.mubr.msk.f32.vlgmr.msra.gmra.mrb[0].mxu0 %vm42_vm0, %v15_v9  ;;  %322 = vmatmul.mubr.msk.f32.vlgmr.msra.gmra.mrb[0].mxu1 %vm42_vm0, %v23_v10 }
   0xf   :  { %312 = vmatprep.mubr.msk.f32.mxu0 %vm42_vm0, %v16_v11  ;;  %324 = vmatprep.mubr.msk.f32.mxu1 %vm42_vm0, %v24_v12 }
  0x12   :  { %313 = vmatmul.mubr.msk.f32.gmra.mrb[2].mxu0 %vm42_vm0, %v17_v13  ;;  %325 = vmatmul.mubr.msk.f32.gmra.mrb[2].mxu1 %vm42_vm0, %v25_v14 }
  0x13   :  { %315 = vmatprep.mubr.msk.f32.mxu0 %vm42_vm0, %v18_v15  ;;  %327 = vmatprep.mubr.msk.f32.mxu1 %vm42_vm0, %v26_v16 }
  0x16   :  { %316 = vmatmul.mubr.msk.f32.gmra.mrb[4].mxu0 %vm42_vm0, %v19_v17  ;;  %328 = vmatmul.mubr.msk.f32.gmra.mrb[4].mxu1 %vm42_vm0, %v27_v18 }
  0x17   :  { %318 = vmatprep.mubr.msk.f32.mxu0 %vm42_vm0, %v20_v19  ;;  %330 = vmatprep.mubr.msk.f32.mxu1 %vm42_vm0, %v28_v20 }
  0x1a   :  { %319 = vmatmul.mubr.msk.f32.gmra.mrb[6].mxu0 %vm42_vm0, %v21_v21  ;;  %331 = vmatmul.mubr.msk.f32.gmra.mrb[6].mxu1 %vm42_vm0, %v29_v22 }
  0xe1   :  { %v311_v24 = vpop.f32.mrb[0].mxu0  ;;  %v323_v25 = vpop.f32.mrb[0].mxu1 }
  0xe2   :  { %v167_v26 = vadd.f32 %v311_v24, %v260_v23  ;;  %v207_v27 = vadd.f32 %v323_v25, %v260_v23  ;;  %v161_v28 = vpop.f32.mrb[1].mxu0  ;;  %v201_v29 = vpop.f32.mrb[1].mxu1 }
  0xe3   :  { %v162_v30 = vadd.f32 %v260_v23, %v161_v28  ;;  %v202_v31 = vadd.f32 %v260_v23, %v201_v29 }
  0xe4   :  { %241 = vst [vmem:[%s500_s3 + $0x8] sm:$0xff] %v167_v26  ;;  %249 = vst [vmem:[%s500_s3 + $0x48] sm:$0xff] %v207_v27 }
  0xe5   :  { %240 = vst [vmem:[%s500_s3] sm:$0xff] %v162_v30  ;;  %248 = vst [vmem:[%s500_s3 + $0x40] sm:$0xff] %v202_v31  ;;  %v314_v32 = vpop.f32.mrb[2].mxu0  ;;  %v326_v33 = vpop.f32.mrb[2].mxu1 }
  0xe6   :  { %v177_v34 = vadd.f32 %v314_v32, %v260_v23  ;;  %v217_v35 = vadd.f32 %v326_v33, %v260_v23  ;;  %v171_v36 = vpop.f32.mrb[3].mxu0  ;;  %v211_v37 = vpop.f32.mrb[3].mxu1 }
  0xe7   :  { %v172_v38 = vadd.f32 %v260_v23, %v171_v36  ;;  %v212_v39 = vadd.f32 %v260_v23, %v211_v37 }
  0xe8   :  { %243 = vst [vmem:[%s500_s3 + $0x18] sm:$0xff] %v177_v34  ;;  %251 = vst [vmem:[%s500_s3 + $0x58] sm:$0xff] %v217_v35 }
  0xe9   :  { %242 = vst [vmem:[%s500_s3 + $0x10] sm:$0xff] %v172_v38  ;;  %250 = vst [vmem:[%s500_s3 + $0x50] sm:$0xff] %v212_v39  ;;  %v317_v40 = vpop.f32.mrb[4].mxu0  ;;  %v329_v41 = vpop.f32.mrb[4].mxu1 }
  0xea   :  { %v187_v42 = vadd.f32 %v317_v40, %v260_v23  ;;  %v227_v43 = vadd.f32 %v329_v41, %v260_v23  ;;  %v181_v44 = vpop.f32.mrb[5].mxu0  ;;  %v221_v45 = vpop.f32.mrb[5].mxu1 }
  0xeb   :  { %v182_v46 = vadd.f32 %v260_v23, %v181_v44  ;;  %v222_v47 = vadd.f32 %v260_v23, %v221_v45 }
  0xec   :  { %245 = vst [vmem:[%s500_s3 + $0x28] sm:$0xff] %v187_v42  ;;  %253 = vst [vmem:[%s500_s3 + $0x68] sm:$0xff] %v227_v43 }
  0xed   :  { %244 = vst [vmem:[%s500_s3 + $0x20] sm:$0xff] %v182_v46  ;;  %252 = vst [vmem:[%s500_s3 + $0x60] sm:$0xff] %v222_v47  ;;  %v320_v48 = vpop.f32.mrb[6].mxu0  ;;  %v332_v49 = vpop.f32.mrb[6].mxu1 }
  0xee   :  { %v197_v50 = vadd.f32 %v320_v48, %v260_v23  ;;  %v237_v51 = vadd.f32 %v332_v49, %v260_v23  ;;  %v191_v52 = vpop.f32.mrb[7].mxu0  ;;  %v231_v53 = vpop.f32.mrb[7].mxu1 }
  0xef   :  { %v192_v54 = vadd.f32 %v260_v23, %v191_v52  ;;  %v232_v55 = vadd.f32 %v260_v23, %v231_v53 }
  0xf0   :  { %247 = vst [vmem:[%s500_s3 + $0x38] sm:$0xff] %v197_v50  ;;  %255 = vst [vmem:[%s500_s3 + $0x78] sm:$0xff] %v237_v51 }
  0xf1   :  { %246 = vst [vmem:[%s500_s3 + $0x30] sm:$0xff] %v192_v54  ;;  %254 = vst [vmem:[%s500_s3 + $0x70] sm:$0xff] %v232_v55 }

// kernel: vim_block_forward.5
= control target key start
LH: loop header
LB: loop body
LE: loop exit
PB: predicated region body
PF: predicated region fallthrough
CT: control target
= control target key end

     0   :  { %v363_v0 = vmov 0.0|0.0   ;;  %vm75_vm0 = vcmask 392192   ;;  %vm269_vm1 = vcmask 31744   ;;  %s651_s1 = inlined_call_operand.vmem [shape: f32[176,4], index: 1, kind: input, shape index: {}]   ;;  %s652_s0 = inlined_call_operand.vmem [shape: f32[128,176], index: 0, kind: input, shape index: {}]   ;;  %s653_s2 = inlined_call_operand.vmem [shape: f32[1,4], index: 2, kind: input, shape index: {}]   ;;  %s654_s3 = inlined_call_operand.vmem [shape: f32[128,4], index: 3, kind: output, shape index: {}]  }
   0x1   :  { %307 = vmatprep.subr.bf16.mxu0 %v363_v0  ;;  %340 = vmatprep.subr.bf16.mxu1 %v363_v0  ;;  %v46_v1 = vld [vmem:[%s651_s1] sm:$0xff]  ;;  %v47_v2 = vld [vmem:[%s651_s1 + $0x8] sm:$0xff]  ;;  %v48_v3 = vld [vmem:[%s651_s1 + $0x10] sm:$0xff] }
   0x2   :  { %v308_v4 = vpack.c.bf16 %v47_v2, %v46_v1  ;;  %v49_v5 = vld [vmem:[%s651_s1 + $0x18] sm:$0xff]  ;;  %v50_v7 = vld [vmem:[%s651_s1 + $0x20] sm:$0xff]  ;;  %v51_v8 = vld [vmem:[%s651_s1 + $0x28] sm:$0xff] }
   0x3   :  { %v311_v6 = vpack.c.bf16 %v49_v5, %v48_v3  ;;  %v314_v9 = vpack.c.bf16 %v51_v8, %v50_v7  ;;  %v15_v10 = vld [vmem:[%s652_s0 + $0x8] sm:$0xff]  ;;  %v52_v12 = vld [vmem:[%s651_s1 + $0x30] sm:$0xff]  ;;  %v53_v13 = vld [vmem:[%s651_s1 + $0x38] sm:$0xff] }
   0x4   :  { %309 = vmatpush1.bf16.msra.mxu0 %v308_v4  ;;  %351 = vmatpush1.bf16.msra.mxu1 %v308_v4  ;;  %v31_v11 = vld [vmem:[%s652_s0 + $0x88] sm:$0xff]  ;;  %v317_v14 = vpack.c.bf16 %v53_v13, %v52_v12  ;;  %v54_v15 = vld [vmem:[%s651_s1 + $0x40] sm:$0xff]  ;;  %v56_v18 = vld [vmem:[%s651_s1 + $0x50] sm:$0xff] }
   0x5   :  { %310 = vmatprep.subr.bf16.mxu0 %v363_v0  ;;  %341 = vmatprep.subr.bf16.mxu1 %v363_v0  ;;  %v55_v16 = vld [vmem:[%s651_s1 + $0x48] sm:$0xff]  ;;  %v57_v19 = vld [vmem:[%s651_s1 + $0x58] sm:$0xff]  ;;  %v58_v21 = vld [vmem:[%s651_s1 + $0x60] sm:$0xff] }
   0x6   :  { %291 = vmatprep.mubr.msk.f32.mxu0 %vm75_vm0, %v15_v10  ;;  %299 = vmatprep.mubr.msk.f32.mxu1 %vm75_vm0, %v31_v11  ;;  %v320_v17 = vpack.c.bf16 %v55_v16, %v54_v15  ;;  %v323_v20 = vpack.c.bf16 %v57_v19, %v56_v18  ;;  %v59_v22 = vld [vmem:[%s651_s1 + $0x68] sm:$0xff]  ;;  %v60_v24 = vld [vmem:[%s651_s1 + $0x70] sm:$0xff]  ;;  %v61_v25 = vld [vmem:[%s651_s1 + $0x78] sm:$0xff] }
   0x7   :  { %v326_v23 = vpack.c.bf16 %v59_v22, %v58_v21  ;;  %v329_v26 = vpack.c.bf16 %v61_v25, %v60_v24  ;;  %v62_v27 = vld [vmem:[%s651_s1 + $0x80] sm:$0xff]  ;;  %v63_v28 = vld [vmem:[%s651_s1 + $0x88] sm:$0xff]  ;;  %v64_v30 = vld [vmem:[%s651_s1 + $0x90] sm:$0xff] }
   0x8   :  { %312 = vmatpush1.bf16.msra.mxu0 %v311_v6  ;;  %352 = vmatpush1.bf16.msra.mxu1 %v311_v6  ;;  %v332_v29 = vpack.c.bf16 %v63_v28, %v62_v27  ;;  %v65_v31 = vld [vmem:[%s651_s1 + $0x98] sm:$0xff]  ;;  %v66_v33 = vld [vmem:[%s651_s1 + $0xa0] sm:$0xff]  ;;  %v67_v34 = vld [vmem:[%s651_s1 + $0xa8] sm:$0xff] }
   0x9   :  { %313 = vmatprep.subr.bf16.mxu0 %v363_v0  ;;  %342 = vmatprep.subr.bf16.mxu1 %v363_v0  ;;  %v335_v32 = vpack.c.bf16 %v65_v31, %v64_v30  ;;  %v338_v35 = vpack.c.bf16 %v67_v34, %v66_v33  ;;  %v14_v36 = vld [vmem:[%s652_s0] sm:$0xff]  ;;  %v17_v38 = vld [vmem:[%s652_s0 + $0x18] sm:$0xff]  ;;  %v16_v40 = vld [vmem:[%s652_s0 + $0x10] sm:$0xff] }
   0xa   :  { %v30_v37 = vld [vmem:[%s652_s0 + $0x80] sm:$0xff]  ;;  %v33_v39 = vld [vmem:[%s652_s0 + $0x98] sm:$0xff]  ;;  %v32_v41 = vld [vmem:[%s652_s0 + $0x90] sm:$0xff] }
   0xb   :  { %v19_v42 = vld [vmem:[%s652_s0 + $0x28] sm:$0xff]  ;;  %v18_v44 = vld [vmem:[%s652_s0 + $0x20] sm:$0xff]  ;;  %v21_v46 = vld [vmem:[%s652_s0 + $0x38] sm:$0xff] }
   0xc   :  { %315 = vmatpush1.bf16.msra.mxu0 %v314_v9  ;;  %353 = vmatpush1.bf16.msra.mxu1 %v314_v9  ;;  %v35_v43 = vld [vmem:[%s652_s0 + $0xa8] sm:$0xff]  ;;  %v34_v45 = vld [vmem:[%s652_s0 + $0xa0] sm:$0xff]  ;;  %v37_v47 = vld [vmem:[%s652_s0 + $0xb8] sm:$0xff] }
   0xd   :  { %316 = vmatprep.subr.bf16.mxu0 %v363_v0  ;;  %343 = vmatprep.subr.bf16.mxu1 %v363_v0  ;;  %v20_v48 = vld [vmem:[%s652_s0 + $0x30] sm:$0xff]  ;;  %v23_v50 = vld [vmem:[%s652_s0 + $0x48] sm:$0xff]  ;;  %v22_v52 = vld [vmem:[%s652_s0 + $0x40] sm:$0xff] }
   0xe   :  { %v36_v49 = vld [vmem:[%s652_s0 + $0xb0] sm:$0xff]  ;;  %v39_v51 = vld [vmem:[%s652_s0 + $0xc8] sm:$0xff]  ;;  %v38_v53 = vld [vmem:[%s652_s0 + $0xc0] sm:$0xff] }
   0xf   :  { %v25_v54 = vld [vmem:[%s652_s0 + $0x58] sm:$0xff]  ;;  %v24_v56 = vld [vmem:[%s652_s0 + $0x50] sm:$0xff]  ;;  %v27_v58 = vld [vmem:[%s652_s0 + $0x68] sm:$0xff] }
  0x10   :  { %318 = vmatpush1.bf16.msra.mxu0 %v317_v14  ;;  %354 = vmatpush1.bf16.msra.mxu1 %v317_v14  ;;  %v41_v55 = vld [vmem:[%s652_s0 + $0xd8] sm:$0xff]  ;;  %v40_v57 = vld [vmem:[%s652_s0 + $0xd0] sm:$0xff]  ;;  %v43_v59 = vld [vmem:[%s652_s0 + $0xe8] sm:$0xff] }
  0x11   :  { %319 = vmatprep.subr.bf16.mxu0 %v363_v0  ;;  %344 = vmatprep.subr.bf16.mxu1 %v363_v0  ;;  %v26_v60 = vld [vmem:[%s652_s0 + $0x60] sm:$0xff]  ;;  %v29_v62 = vld [vmem:[%s652_s0 + $0x78] sm:$0xff]  ;;  %v44_v1 = vld [vmem:[%s652_s0 + $0xf0] sm:$0xff] }
  0x12   :  { %v42_v61 = vld [vmem:[%s652_s0 + $0xe0] sm:$0xff]  ;;  %v45_v63 = vld [vmem:[%s652_s0 + $0xf8] sm:$0xff] }
  0x13   :  { %v290_v2 = vld [vmem:[%s653_s2] ss:$0 sm:$0xff] }
  0x14   :  { %321 = vmatpush1.bf16.msra.mxu0 %v320_v17  ;;  %355 = vmatpush1.bf16.msra.mxu1 %v320_v17 }
  0x15   :  { %322 = vmatprep.subr.bf16.mxu0 %v363_v0  ;;  %345 = vmatprep.subr.bf16.mxu1 %v363_v0 }
  0x18   :  { %324 = vmatpush1.bf16.msra.mxu0 %v323_v20  ;;  %356 = vmatpush1.bf16.msra.mxu1 %v323_v20 }
  0x19   :  { %325 = vmatprep.subr.bf16.mxu0 %v363_v0  ;;  %346 = vmatprep.subr.bf16.mxu1 %v363_v0 }
  0x1c   :  { %327 = vmatpush1.bf16.msra.mxu0 %v326_v23  ;;  %357 = vmatpush1.bf16.msra.mxu1 %v326_v23 }
  0x1d   :  { %328 = vmatprep.subr.bf16.mxu0 %v363_v0  ;;  %347 = vmatprep.subr.bf16.mxu1 %v363_v0 }
  0x20   :  { %330 = vmatpush1.bf16.msra.mxu0 %v329_v26  ;;  %358 = vmatpush1.bf16.msra.mxu1 %v329_v26 }
  0x21   :  { %331 = vmatprep.subr.bf16.mxu0 %v363_v0  ;;  %348 = vmatprep.subr.bf16.mxu1 %v363_v0 }
  0x24   :  { %333 = vmatpush1.bf16.msra.mxu0 %v332_v29  ;;  %359 = vmatpush1.bf16.msra.mxu1 %v332_v29 }
  0x25   :  { %334 = vmatprep.subr.bf16.mxu0 %v363_v0  ;;  %349 = vmatprep.subr.bf16.mxu1 %v363_v0 }
  0x28   :  { %336 = vmatpush1.bf16.msra.mxu0 %v335_v32  ;;  %360 = vmatpush1.bf16.msra.mxu1 %v335_v32 }
  0x29   :  { %337 = vmatprep.subr.bf16.mxu0 %v363_v0  ;;  %350 = vmatprep.subr.bf16.mxu1 %v363_v0  ;;  %v28_v0 = vld [vmem:[%s652_s0 + $0x70] sm:$0xff] }
  0x2c   :  { %339 = vmatpush1.bf16.msra.mxu0 %v338_v35  ;;  %361 = vmatpush1.bf16.msra.mxu1 %v338_v35 }
  0x2f   :  { %189 = vmatmul.mubr.f32.vlgmr.msra.gmra.mrb[0].mxu0 %v14_v36  ;;  %229 = vmatmul.mubr.f32.vlgmr.msra.gmra.mrb[0].mxu1 %v30_v37 }
  0x30   :  { %292 = vmatprep.mubr.msk.f32.mxu0 %vm75_vm0, %v17_v38  ;;  %300 = vmatprep.mubr.msk.f32.mxu1 %vm75_vm0, %v33_v39 }
  0x33   :  { %194 = vmatmul.mubr.f32.gmra.mrb[2].mxu0 %v16_v40  ;;  %234 = vmatmul.mubr.f32.gmra.mrb[2].mxu1 %v32_v41 }
  0x34   :  { %293 = vmatprep.mubr.msk.f32.mxu0 %vm75_vm0, %v19_v42  ;;  %301 = vmatprep.mubr.msk.f32.mxu1 %vm75_vm0, %v35_v43 }
  0x37   :  { %199 = vmatmul.mubr.f32.gmra.mrb[4].mxu0 %v18_v44  ;;  %239 = vmatmul.mubr.f32.gmra.mrb[4].mxu1 %v34_v45 }
  0x38   :  { %294 = vmatprep.mubr.msk.f32.mxu0 %vm75_vm0, %v21_v46  ;;  %302 = vmatprep.mubr.msk.f32.mxu1 %vm75_vm0, %v37_v47 }
  0x3b   :  { %204 = vmatmul.mubr.f32.gmra.mrb[6].mxu0 %v20_v48  ;;  %244 = vmatmul.mubr.f32.gmra.mrb[6].mxu1 %v36_v49 }
  0x3c   :  { %295 = vmatprep.mubr.msk.f32.mxu0 %vm75_vm0, %v23_v50  ;;  %303 = vmatprep.mubr.msk.f32.mxu1 %vm75_vm0, %v39_v51 }
  0x3f   :  { %209 = vmatmul.mubr.f32.gmra.mrb[8].mxu0 %v22_v52  ;;  %249 = vmatmul.mubr.f32.gmra.mrb[8].mxu1 %v38_v53 }
  0x40   :  { %296 = vmatprep.mubr.msk.f32.mxu0 %vm75_vm0, %v25_v54  ;;  %304 = vmatprep.mubr.msk.f32.mxu1 %vm75_vm0, %v41_v55 }
  0x43   :  { %214 = vmatmul.mubr.f32.gmra.mrb[10].mxu0 %v24_v56  ;;  %254 = vmatmul.mubr.f32.gmra.mrb[10].mxu1 %v40_v57 }
  0x44   :  { %297 = vmatprep.mubr.msk.f32.mxu0 %vm75_vm0, %v27_v58  ;;  %305 = vmatprep.mubr.msk.f32.mxu1 %vm75_vm0, %v43_v59 }
  0x47   :  { %219 = vmatmul.mubr.f32.gmra.mrb[12].mxu0 %v26_v60  ;;  %259 = vmatmul.mubr.f32.gmra.mrb[12].mxu1 %v42_v61 }
  0x48   :  { %298 = vmatprep.mubr.msk.f32.mxu0 %vm75_vm0, %v29_v62  ;;  %306 = vmatprep.mubr.msk.f32.mxu1 %vm75_vm0, %v45_v63 }
  0x4b   :  { %224 = vmatmul.mubr.f32.gmra.mrb[14].mxu0 %v28_v0  ;;  %264 = vmatmul.mubr.f32.gmra.mrb[14].mxu1 %v44_v1 }
 0x102   :  { %v190_v3 = vpop.f32.mrb[0].mxu0  ;;  %v230_v4 = vpop.f32.mrb[0].mxu1 }
 0x103   :  { %v191_v5 = vadd.f32 %v290_v2, %v190_v3  ;;  %v231_v6 = vadd.f32 %v290_v2, %v230_v4  ;;  %v192_v7 = vpop.f32.mrb[1].mxu0  ;;  %v232_v8 = vpop.f32.mrb[1].mxu1 }
 0x105   :  { %270 = vst.msk [vmem:[%s654_s3] sm:$0xff] %vm269_vm1, %v191_v5  ;;  %278 = vst.msk [vmem:[%s654_s3 + $0x40] sm:$0xff] %vm269_vm1, %v231_v6 }
 0x106   :  { %v195_v9 = vpop.f32.mrb[2].mxu0  ;;  %v235_v10 = vpop.f32.mrb[2].mxu1 }
 0x107   :  { %v196_v11 = vadd.f32 %v290_v2, %v195_v9  ;;  %v236_v12 = vadd.f32 %v290_v2, %v235_v10  ;;  %v197_v13 = vpop.f32.mrb[3].mxu0  ;;  %v237_v14 = vpop.f32.mrb[3].mxu1 }
 0x109   :  { %271 = vst.msk [vmem:[%s654_s3 + $0x8] sm:$0xff] %vm269_vm1, %v196_v11  ;;  %279 = vst.msk [vmem:[%s654_s3 + $0x48] sm:$0xff] %vm269_vm1, %v236_v12 }
 0x10a   :  { %v200_v15 = vpop.f32.mrb[4].mxu0  ;;  %v240_v16 = vpop.f32.mrb[4].mxu1 }
 0x10b   :  { %v201_v17 = vadd.f32 %v290_v2, %v200_v15  ;;  %v241_v18 = vadd.f32 %v290_v2, %v240_v16  ;;  %v202_v19 = vpop.f32.mrb[5].mxu0  ;;  %v242_v20 = vpop.f32.mrb[5].mxu1 }
 0x10d   :  { %272 = vst.msk [vmem:[%s654_s3 + $0x10] sm:$0xff] %vm269_vm1, %v201_v17  ;;  %280 = vst.msk [vmem:[%s654_s3 + $0x50] sm:$0xff] %vm269_vm1, %v241_v18 }
 0x10e   :  { %v205_v21 = vpop.f32.mrb[6].mxu0  ;;  %v245_v22 = vpop.f32.mrb[6].mxu1 }
 0x10f   :  { %v206_v23 = vadd.f32 %v290_v2, %v205_v21  ;;  %v246_v24 = vadd.f32 %v290_v2, %v245_v22  ;;  %v207_v25 = vpop.f32.mrb[7].mxu0  ;;  %v247_v26 = vpop.f32.mrb[7].mxu1 }
 0x111   :  { %273 = vst.msk [vmem:[%s654_s3 + $0x18] sm:$0xff] %vm269_vm1, %v206_v23  ;;  %281 = vst.msk [vmem:[%s654_s3 + $0x58] sm:$0xff] %vm269_vm1, %v246_v24 }
 0x112   :  { %v210_v27 = vpop.f32.mrb[8].mxu0  ;;  %v250_v28 = vpop.f32.mrb[8].mxu1 }
 0x113   :  { %v211_v29 = vadd.f32 %v290_v2, %v210_v27  ;;  %v251_v30 = vadd.f32 %v290_v2, %v250_v28  ;;  %v212_v31 = vpop.f32.mrb[9].mxu0  ;;  %v252_v32 = vpop.f32.mrb[9].mxu1 }
 0x115   :  { %274 = vst.msk [vmem:[%s654_s3 + $0x20] sm:$0xff] %vm269_vm1, %v211_v29  ;;  %282 = vst.msk [vmem:[%s654_s3 + $0x60] sm:$0xff] %vm269_vm1, %v251_v30 }
 0x116   :  { %v215_v33 = vpop.f32.mrb[10].mxu0  ;;  %v255_v34 = vpop.f32.mrb[10].mxu1 }
 0x117   :  { %v216_v35 = vadd.f32 %v290_v2, %v215_v33  ;;  %v256_v36 = vadd.f32 %v290_v2, %v255_v34  ;;  %v217_v37 = vpop.f32.mrb[11].mxu0  ;;  %v257_v38 = vpop.f32.mrb[11].mxu1 }
 0x119   :  { %275 = vst.msk [vmem:[%s654_s3 + $0x28] sm:$0xff] %vm269_vm1, %v216_v35  ;;  %283 = vst.msk [vmem:[%s654_s3 + $0x68] sm:$0xff] %vm269_vm1, %v256_v36 }
 0x11a   :  { %v220_v39 = vpop.f32.mrb[12].mxu0  ;;  %v260_v40 = vpop.f32.mrb[12].mxu1 }
 0x11b   :  { %v221_v41 = vadd.f32 %v290_v2, %v220_v39  ;;  %v261_v42 = vadd.f32 %v290_v2, %v260_v40  ;;  %v222_v43 = vpop.f32.mrb[13].mxu0  ;;  %v262_v44 = vpop.f32.mrb[13].mxu1 }
 0x11d   :  { %276 = vst.msk [vmem:[%s654_s3 + $0x30] sm:$0xff] %vm269_vm1, %v221_v41  ;;  %284 = vst.msk [vmem:[%s654_s3 + $0x70] sm:$0xff] %vm269_vm1, %v261_v42 }
 0x11e   :  { %v225_v45 = vpop.f32.mrb[14].mxu0  ;;  %v265_v46 = vpop.f32.mrb[14].mxu1 }
 0x11f   :  { %v226_v47 = vadd.f32 %v290_v2, %v225_v45  ;;  %v266_v48 = vadd.f32 %v290_v2, %v265_v46  ;;  %v227_v49 = vpop.f32.mrb[15].mxu0  ;;  %v267_v50 = vpop.f32.mrb[15].mxu1 }
 0x121   :  { %277 = vst.msk [vmem:[%s654_s3 + $0x38] sm:$0xff] %vm269_vm1, %v226_v47  ;;  %285 = vst.msk [vmem:[%s654_s3 + $0x78] sm:$0xff] %vm269_vm1, %v266_v48 }

// kernel: vim_block_forward.4
= control target key start
LH: loop header
LB: loop body
LE: loop exit
PB: predicated region body
PF: predicated region fallthrough
CT: control target
= control target key end

     0   :  { %s5362_s30 = smov 0   ;;  %s6479_s0 = inlined_call_operand.vmem [shape: f32[2,8,256], index: 0, kind: input, shape index: {}]   ;;  %s6480_s1 = inlined_call_operand.vmem [shape: f32[2,8,512], index: 1, kind: input, shape index: {}]   ;;  %s6481_s2 = inlined_call_operand.vmem [shape: f32[2,8,256], index: 2, kind: input, shape index: {}]   ;;  %s6482_s3 = inlined_call_operand.vmem [shape: f32[2,4,512], index: 3, kind: input, shape index: {}]   ;;  %s6483_s4 = inlined_call_operand.vmem [shape: f32[2,1,512], index: 4, kind: input, shape index: {}]   ;;  %s6484_s5 = inlined_call_operand.vmem [shape: f32[2,1,256], index: 5, kind: input, shape index: {}]   ;;  %s6485_s6 = inlined_call_operand.vmem [shape: f32[2,1,256], index: 6, kind: input, shape index: {}]   ;;  %s6486_s7 = inlined_call_operand.vmem [shape: f32[2,1,256], index: 7, kind: input, shape index: {}]   ;;  %s6487_s8 = inlined_call_operand.vmem [shape: f32[2,1,256], index: 8, kind: input, shape index: {}]   ;;  %s6488_s9 = inlined_call_operand.vmem [shape: f32[8,512], index: 9, kind: output, shape index: {}]  }
   0x1 LB: > { %s5368_s10 = sadd.s32 4294967295, %s5307_s30   ;;  %p4405_p0 = scmp.ge.s32.totalorder %s5307_s30, 1  ;;  %s5307_s30 = sphi %s5362_s30, %s19_s30  }
   0x2   : > { %p362_p1 = scmp.lt.s32.totalorder %s5307_s30, 3 }
   0x4   : > { %p363_p2 = pnand %p4405_p0, %p362_p1 }
   0x6   : > { %366 = sbr.rel (%p363_p2) target bundleno = 1616 (0x650), region = 56 }
   0xd   : > { %p433_p3 = scmp.lt.s32.totalorder %s5368_s10, 1  ;;  %v494_v0 = vlaneseq  ;;  %v6502_v1 = vmov 0.0   ;;  %vm6489_vm0 = vcmask 64512  }
   0xe   : > { %612 = vmatprep.mubr.f32.mxu1 %v6502_v1  ;;  %996 = vmatprep.mubr.f32.mxu0 %v6502_v1 }
   0xf   : > { %s5376_s11 = scalar_select %p433_p3, %s5368_s10, 1  ;;  %v5378_v2 = vshrl.u32 %v494_v0, 7  ;;  %v5380_v3 = vand.u32 127, %v494_v0 }
  0x11   : > { %6527 = vst [vmem:[#allocation2_spill] sm:$0xff] %v5378_v2  ;;  %s4850_s12 = sshll.u32 %s5376_s11, 5  ;;  %v5385_v4 = vsub.s32 %v5378_v2, %v5380_v3  ;;  %s5388_s13 = sshll.u32 %s5376_s11, 4  ;;  %v5405_v8 = vsub.s32 1, %v5378_v2  ;;  %v5408_v9 = vsub.s32 0, %v5378_v2  ;;  %vm1233_vm8 = vcmp.ge.s32.totalorder %v5378_v2, %v5380_v3 }
  0x12   : > { %s442_s16 = scalar_lea.vmem %s6480_s1, %s4850_s12  ;;  %s447_s19 = scalar_lea.vmem %s6481_s2, %s5388_s13  ;;  %v4434_v56 = vsel %vm1233_vm8, 1.0, %v6502_v1  ;;  %v1340_v57 = vadd.s32 128, %v5380_v3  ;;  %v1325_v59 = vadd.s32 8, %v5378_v2  ;;  %v5484_v60 = vand.u32 15, %v5380_v3 }
  0x13   : > { %v5393_v5 = vld [vmem:[%s442_s16 + $0x8] sm:$0xff]  ;;  %v5395_v6 = vld [vmem:[%s442_s16] sm:$0xff]  ;;  %vm541_vm1 = vcmp.eq.s32.totalorder %v5385_v4, 1  ;;  %v5398_v7 = vld [vmem:[%s442_s16 + $0x18] sm:$0xff]  ;;  %vm926_vm2 = vcmp.eq.s32.totalorder %v5385_v4, 3  ;;  %s5419_s20 = sshll.u32 %s5376_s11, 1  ;;  %s452_s29 = scalar_lea.vmem %s6482_s3, %s5388_s13 }
  0x14   : > { %548 = vmatprep.subr.mxu1 %v5393_v5  ;;  %v5412_v10 = vsel %vm541_vm1, 1.0, %v6502_v1  ;;  %v5414_v11 = vld [vmem:[%s442_s16 + $0x10] sm:$0xff]  ;;  %932 = vmatprep.subr.mxu0 %v5393_v5  ;;  %v5424_v12 = vsel %vm926_vm2, 1.0, %v6502_v1  ;;  %s468_s23 = scalar_lea.vmem %s6486_s7, %s5419_s20  ;;  %v485_v13 = vld [vmem:[%s447_s19] sm:$0xff]  ;;  %v486_v14 = vld [vmem:[%s447_s19 + $0x8] sm:$0xff]  ;;  %vm734_vm3 = vcmp.eq.s32.totalorder %v5385_v4, 2  ;;  %s460_s26 = scalar_lea.vmem %s6484_s5, %s5419_s20 }
  0x15   : > { %549 = vmatpush1.msra.mxu1 %v5395_v6  ;;  %933 = vmatpush1.msra.mxu0 %v5395_v6  ;;  %6528 = vst [vmem:[#allocation3_spill] sm:$0xff] %v5424_v12  ;;  %v492_v15 = vld [vmem:[%s468_s23] sm:$0x3]  ;;  %v5447_v20 = vsel %vm734_vm3, 1.0, %v6502_v1  ;;  %v5480_v58 = vand.u32 15, %v1340_v57  ;;  %6530 = vst [vmem:[#allocation5_spill] sm:$0xff] %v5484_v60  ;;  %s464_s18 = scalar_lea.vmem %s6485_s6, %s5419_s20  ;;  %s437_s22 = scalar_lea.vmem %s6479_s0, %s5388_s13 }
  0x16   : > { %4422 = vmatmul.mubr.msk.f32.vlgmr.msra.gmra.mrb[0].mxu1 %vm6489_vm0, %v5412_v10  ;;  %619 = vmatprep.subr.mxu1 %v5398_v7  ;;  %v1175_v16 = vrot.slane %v492_v15, %v5408_v9  ;;  %v1179_v17 = vrot.slane %v492_v15, %v5405_v8  ;;  %v490_v39 = vld [vmem:[%s460_s26] sm:$0x3]  ;;  %v1345_v61 = vand.u32 15, %v5378_v2  ;;  %v1352_v62 = vand.u32 15, %v1325_v59  ;;  %s4414_s12 = sshll.u32 %s5376_s11, 2  ;;  %s4419_s13 = sshll.u32 %s5368_s10, 1 }
  0x17   : > { %620 = vmatpush1.msra.mxu1 %v5414_v11  ;;  %683 = vmatprep.mubr.f32.mxu1 %v6502_v1  ;;  %v1228_v47 = vrot.slane %v490_v39, %v5405_v8  ;;  %v1224_v49 = vrot.slane %v490_v39, %v5408_v9  ;;  %6529 = vst [vmem:[#allocation4_spill] sm:$0xff] %v5480_v58  ;;  %v1326_v63 = vadd.s32 16, %v5378_v2  ;;  %v6549_v39 = vmov 0  ;;  %s456_s15 = scalar_lea.vmem %s6483_s4, %s4414_s12  ;;  %p474_p4 = scmp.lt.s32.totalorder %s4419_s13, 3 }
  0x18   : > { %740 = vmatprep.subr.mxu1 %v5393_v5  ;;  %4428 = vmatmul.mubr.msk.f32.vlgmr.msra.gmra.mrb[0].mxu0 %vm6489_vm0, %v5424_v12  ;;  %v1183_v18 = vadd.f32 %v1179_v17, %v486_v14  ;;  %v1182_v19 = vadd.f32 %v1175_v16, %v485_v13  ;;  %vm1558_vm9 = vcmp.eq.s32.totalorder %v1345_v61, %v5480_v58  ;;  %v6500_v13 = vmov 1.0|1.0   ;;  %v6598_v0 = vld [vmem:[#allocation2_spill] sm:$0xff]  ;;  %s472_s25 = scalar_lea.vmem %s6487_s8, %s5419_s20 }
  0x19   : > { %1303 = vmatprep.mubr.f32.mxu0 %v6502_v1  ;;  %vm1560_vm10 = vcmp.eq.s32.totalorder %v1352_v62, %v5480_v58  ;;  %vm1557_vm12 = vcmp.eq.s32.totalorder %v1345_v61, %v5484_v60  ;;  %vm1559_vm13 = vcmp.eq.s32.totalorder %v1352_v62, %v5484_v60  ;;  %v1327_v14 = vadd.s32 24, %v5378_v2  ;;  %v487_v61 = vld [vmem:[%s452_s29] sm:$0xff]  ;;  %s6610_s13 = smov (!%p474_p4, %s4419_s13), 3 }
  0x1a   : > { %4423 = vmatmul.mubr.msk.f32.vlgmr.msra.gmra.mrb[2].mxu1 %vm6489_vm0, %v5412_v10  ;;  %v1191_v21 = vand.u32 2147483647, %v1183_v18  ;;  %v1190_v22 = vand.u32 2147483647, %v1182_v19  ;;  %v1185_v40 = vmax.f32 %v1183_v18, 0.0  ;;  %v1184_v44 = vmax.f32 %v1182_v19, 0.0  ;;  %vm5490_vm11 = vmpackc.low %vm1560_vm10, %vm1558_vm9 }
  0x1b   : > { %741 = vmatpush1.msra.mxu1 %v5395_v6  ;;  %804 = vmatprep.mubr.f32.mxu1 %v6502_v1  ;;  %vm1187_vm6 = vcmp.ne.f32.partialorder %v1183_v18, %v1183_v18  ;;  %vm1186_vm7 = vcmp.ne.f32.partialorder %v1182_v19, %v1182_v19  ;;  %vm5499_vm14 = vmpackc.low %vm1559_vm13, %vm1557_vm12  ;;  %v1359_v15 = vand.u32 15, %v1326_v63  ;;  %v1366_v16 = vand.u32 15, %v1327_v14  ;;  %s4420_s26 = sshll.u32 %s6610_s13, 3 }
  0x1c   : > { %811 = vmatprep.subr.mxu1 %v5398_v7  ;;  %v1193_v23 = vsub.f32 0.0, %v1191_v21  ;;  %v1192_v24 = vsub.f32 0.0, %v1190_v22  ;;  %v1328_v17 = vadd.s32 32, %v5378_v2  ;;  %v6561_v57 = vmov 0  ;;  %s477_s28 = scalar_lea.vmem %s6488_s9, %s4420_s26 }
  0x1d   : > { %vm1562_vm15 = vcmp.eq.s32.totalorder %v1359_v15, %v5480_v58  ;;  %vm1561_vm1 = vcmp.eq.s32.totalorder %v1359_v15, %v5484_v60  ;;  %vm1564_vm2 = vcmp.eq.s32.totalorder %v1366_v16, %v5480_v58  ;;  %vm1563_vm3 = vcmp.eq.s32.totalorder %v1366_v16, %v5484_v60 }
  0x1e   : > { %4425 = vmatmul.mubr.msk.f32.vlgmr.msra.gmra.mrb[4].mxu1 %vm6489_vm0, %v5447_v20  ;;  %v1196_v25 = vmul.f32 1.442695, %v1193_v23  ;;  %v1194_v26 = vmul.f32 1.442695, %v1192_v24  ;;  %v1330_v24 = vadd.s32 48, %v5378_v2  ;;  %v5653_v59 = vsub.s32 3, %v5378_v2 }
  0x1f   : > { %812 = vmatpush1.msra.mxu1 %v5414_v11  ;;  %875 = vmatprep.mubr.f32.mxu1 %v6502_v1  ;;  %v5656_v62 = vsub.s32 2, %v5378_v2  ;;  %v506_v14 = vsub.s32 7, %v5378_v2  ;;  %v696_v16 = vsub.s32 6, %v5378_v2  ;;  %v3849_v3 = vadd.s32 128, %v6598_v0 }
  0x20   : > { %1003 = vmatprep.subr.mxu1 %v5398_v7  ;;  %5233 = vpow2.f32 %v1196_v25  ;;  %v1331_v25 = vadd.s32 56, %v5378_v2  ;;  %v503_v63 = vrot.slane %v487_v61, %v5653_v59  ;;  %v3850_v22 = vadd.s32 136, %v6598_v0 }
  0x21   : > { %5235 = vpow2.f32 %v1194_v26  ;;  %v693_v15 = vrot.slane %v487_v61, %v5656_v62  ;;  %v3851_v23 = vadd.s32 144, %v6598_v0  ;;  %v3852_v26 = vadd.s32 152, %v6598_v0 }
  0x22   : > { %4426 = vmatmul.mubr.msk.f32.vlgmr.msra.gmra.mrb[6].mxu1 %vm6489_vm0, %v5447_v20 }
  0x23   : > { %1004 = vmatpush1.msra.mxu1 %v5414_v11  ;;  %1067 = vmatprep.mubr.f32.mxu1 %v6502_v1 }
  0x24   : > { %4872 = vmatprep.subr.mxu1 %v6502_v1 }
  0x26   : > { %4429 = vmatmul.mubr.msk.f32.vlgmr.msra.gmra.mrb[8].mxu1 %vm6489_vm0, %v5424_v12 }
  0x2a   : > { %v5234_v27 = vpop.eup %5233 }
  0x2b   : > { %v5236_v28 = vpop.eup %5235  ;;  %v1207_v29 = vadd.f32 1.0, %v5234_v27  ;;  %v1210_v31 = vmul.f32 -0.5, %v5234_v27  ;;  %v1213_v34 = vand.u32 2147483647, %v5234_v27 }
  0x2c   : > { %v1198_v30 = vadd.f32 1.0, %v5236_v28  ;;  %v1201_v32 = vmul.f32 -0.5, %v5236_v28  ;;  %v1204_v36 = vand.u32 2147483647, %v5236_v28 }
  0x2d   : > { %5237 = vlog2.f32 %v1207_v29  ;;  %v1211_v33 = vadd.f32 1.0, %v1210_v31  ;;  %vm1214_vm4 = vcmp.lt.f32.partialorder %v1213_v34, 0.0004427343  ;;  %v1394_v29 = vand.u32 15, %v1331_v25 }
  0x2e   : > { %5239 = vlog2.f32 %v1198_v30  ;;  %v1202_v35 = vadd.f32 1.0, %v1201_v32  ;;  %vm1205_vm5 = vcmp.lt.f32.partialorder %v1204_v36, 0.0004427343  ;;  %v1332_v30 = vadd.s32 64, %v5378_v2 }
  0x2f   : > { %v1212_v37 = vmul.f32 %v5234_v27, %v1211_v33  ;;  %v1333_v31 = vadd.s32 72, %v5378_v2  ;;  %v1334_v36 = vadd.s32 80, %v5378_v2  ;;  %v888_v25 = vsub.s32 5, %v5378_v2 }
  0x30   : > { %v1203_v41 = vmul.f32 %v5236_v28, %v1202_v35  ;;  %v1387_v28 = vand.u32 15, %v1330_v24  ;;  %v1401_v34 = vand.u32 15, %v1332_v30  ;;  %v697_v24 = vrot.slane %v487_v61, %v696_v16 }
  0x31   : > { %v1408_v35 = vand.u32 15, %v1333_v31  ;;  %v3853_v27 = vadd.s32 160, %v6598_v0  ;;  %v3854_v32 = vadd.s32 168, %v6598_v0  ;;  %v3855_v33 = vadd.s32 176, %v6598_v0 }
  0x32   : > { %vm1570_vm13 = vcmp.eq.s32.totalorder %v1387_v28, %v5480_v58 }
  0x37   : > { %v5238_v38 = vpop.eup %5237 }
  0x38   : > { %v5240_v42 = vpop.eup %5239  ;;  %v1209_v43 = vmul.f32 0.6931472, %v5238_v38  ;;  %v6547_v38 = vmov 0 }
  0x39   : > { %v1200_v45 = vmul.f32 0.6931472, %v5240_v42  ;;  %v1336_v42 = vadd.s32 96, %v5378_v2 }
  0x3a   : > { %v1215_v46 = vsel %vm1214_vm4, %v1212_v37, %v1209_v43  ;;  %vm5513_vm4 = vmpackc.low %vm1564_vm2, %vm1562_vm15  ;;  %vm1572_vm15 = vcmp.eq.s32.totalorder %v1394_v29, %v5480_v58  ;;  %vm1569_vm2 = vcmp.eq.s32.totalorder %v1387_v28, %v5484_v60  ;;  %v1335_v37 = vadd.s32 88, %v5378_v2 }
  0x3b   : > { %v1217_v48 = vadd.f32 %v1215_v46, %v1185_v40  ;;  %v1206_v50 = vsel %vm1205_vm5, %v1203_v41, %v1200_v45  ;;  %vm5520_vm5 = vmpackc.low %vm1563_vm3, %vm1561_vm1  ;;  %vm1571_vm3 = vcmp.eq.s32.totalorder %v1394_v29, %v5484_v60  ;;  %v1415_v40 = vand.u32 15, %v1334_v36 }
  0x3c   : > { %v1216_v51 = vadd.f32 %v1206_v50, %v1184_v44  ;;  %vm5551_vm1 = vmpackc.low %vm1572_vm15, %vm1570_vm13  ;;  %vm1573_vm13 = vcmp.eq.s32.totalorder %v1401_v34, %v5484_v60  ;;  %vm1575_vm15 = vcmp.eq.s32.totalorder %v1408_v35, %v5484_v60  ;;  %v1422_v41 = vand.u32 15, %v1335_v37 }
  0x3d   : > { %v5470_v52 = vsel %vm1187_vm6, %v1183_v18, %v1217_v48  ;;  %v1329_v18 = vadd.s32 40, %v5378_v2  ;;  %v1337_v43 = vadd.s32 104, %v5378_v2  ;;  %v6551_v44 = vmov 0 }
  0x3e   : > { %v1232_v53 = vmul.f32 %v1228_v47, %v5470_v52  ;;  %v5473_v54 = vsel %vm1186_vm7, %v1182_v19, %v1216_v51  ;;  %v1373_v19 = vand.u32 15, %v1328_v17  ;;  %v6553_v45 = vmov 0 }
  0x3f   : > { %v1231_v55 = vmul.f32 %v1224_v49, %v5473_v54  ;;  %v1380_v21 = vand.u32 15, %v1329_v18  ;;  %v1429_v46 = vand.u32 15, %v1336_v42  ;;  %v1436_v47 = vand.u32 15, %v1337_v43 }
  0x40   : > { %1239 = vmatprep.subr.mxu0 %v1232_v53  ;;  %vm1566_vm6 = vcmp.eq.s32.totalorder %v1373_v19, %v5480_v58  ;;  %vm1565_vm9 = vcmp.eq.s32.totalorder %v1373_v19, %v5484_v60  ;;  %v1338_v48 = vadd.s32 112, %v5378_v2  ;;  %v1339_v49 = vadd.s32 120, %v5378_v2  ;;  %v5663_v19 = vld [vmem:[%s452_s29 + $0x8] sm:$0xff] }
  0x41   : > { %1240 = vmatpush1.msra.mxu0 %v1231_v55  ;;  %vm1568_vm7 = vcmp.eq.s32.totalorder %v1380_v21, %v5480_v58  ;;  %vm1567_vm10 = vcmp.eq.s32.totalorder %v1380_v21, %v5484_v60  ;;  %v6555_v50 = vmov 0  ;;  %v6557_v51 = vmov 0 }
  0x42   : > { %4435 = vmatmul.mubr.msk.f32.vlgmr.msra.gmra.mrb[2].mxu0 %vm6489_vm0, %v4434_v56  ;;  %4903 = vmatprep.subr.msk.bf16.mxu0 %vm5490_vm11, %v6500_v13  ;;  %vm5531_vm8 = vmpackc.low %vm1568_vm7, %vm1566_vm6  ;;  %vm1574_vm7 = vcmp.eq.s32.totalorder %v1401_v34, %v5480_v58  ;;  %v1443_v53 = vand.u32 15, %v1338_v48  ;;  %v1450_v55 = vand.u32 15, %v1339_v49  ;;  %v6559_v56 = vmov 0 }
  0x43   : > { %1718 = vmatprep.mubr.f32.mxu0 %v6502_v1  ;;  %4905 = vmatpush1.bf16.msk.msra.mxu0 %vm5499_vm14, %v6500_v13  ;;  %vm5540_vm12 = vmpackc.low %vm1567_vm10, %vm1565_vm9  ;;  %vm1576_vm9 = vcmp.eq.s32.totalorder %v1408_v35, %v5480_v58  ;;  %v523_v17 = vrot.slane %v503_v63, %v5653_v59  ;;  %v507_v18 = vrot.slane %v487_v61, %v506_v14  ;;  %v1080_v28 = vsub.s32 4, %v5378_v2 }
  0x44   : > { %4907 = vmatprep.subr.msk.bf16.mxu0 %vm5513_vm4, %v6500_v13  ;;  %vm5560_vm6 = vmpackc.low %vm1571_vm3, %vm1569_vm2  ;;  %vm1578_vm3 = vcmp.eq.s32.totalorder %v1415_v40, %v5480_v58  ;;  %v713_v21 = vrot.slane %v693_v15, %v5656_v62  ;;  %v511_v30 = vrot.slane %v5663_v19, %v5653_v59  ;;  %v515_v35 = vrot.slane %v5663_v19, %v506_v14 }
  0x45   : > { %vm5571_vm10 = vmpackc.low %vm1576_vm9, %vm1574_vm7  ;;  %vm1580_vm7 = vcmp.eq.s32.totalorder %v1422_v41, %v5480_v58  ;;  %v536_v29 = vmul.f32 %v523_v17, %v5395_v6  ;;  %v527_v34 = vrot.slane %v507_v18, %v5653_v59  ;;  %v1077_v42 = vrot.slane %v487_v61, %v5408_v9 }
  0x46   : > { %v6548_v38 = vsel %vm5571_vm10, 4294967295, %v6547_v38  ;;  %vm5580_vm2 = vmpackc.low %vm1575_vm15, %vm1573_vm13  ;;  %vm1577_vm13 = vcmp.eq.s32.totalorder %v1415_v40, %v5484_v60  ;;  %vm1579_vm15 = vcmp.eq.s32.totalorder %v1422_v41, %v5484_v60  ;;  %v701_v40 = vrot.slane %v5663_v19, %v5656_v62 }
  0x47   : > { %4909 = vmatpush1.bf16.msk.msra.mxu0 %vm5520_vm5, %v6500_v13  ;;  %v6550_v39 = vsel %vm5580_vm2, 4294967295, %v6549_v39  ;;  %vm5591_vm9 = vmpackc.low %vm1580_vm7, %vm1578_vm3  ;;  %vm1584_vm3 = vcmp.eq.s32.totalorder %v1436_v47, %v5480_v58  ;;  %v885_v41 = vrot.slane %v487_v61, %v5405_v8  ;;  %v717_v43 = vrot.slane %v697_v24, %v5656_v62 }
  0x48   : > { %4911 = vmatprep.subr.msk.bf16.mxu0 %vm5531_vm8, %v6500_v13  ;;  %v6552_v44 = vsel %vm5591_vm9, 4294967295, %v6551_v44  ;;  %vm5600_vm0 = vmpackc.low %vm1579_vm15, %vm1577_vm13  ;;  %vm1581_vm13 = vcmp.eq.s32.totalorder %v1429_v46, %v5484_v60  ;;  %vm1583_vm15 = vcmp.eq.s32.totalorder %v1436_v47, %v5484_v60  ;;  %v705_v6 = vrot.slane %v5663_v19, %v696_v16 }
  0x49   : > { %v6554_v45 = vsel %vm5600_vm0, 4294967295, %v6553_v45  ;;  %v1081_v48 = vrot.slane %v487_v61, %v1080_v28  ;;  %v535_v14 = vrot.slane %v515_v35, %v5653_v59  ;;  %v893_v15 = vrot.slane %v5663_v19, %v5405_v8 }
  0x4a   : > { %v897_v17 = vrot.slane %v5663_v19, %v888_v25  ;;  %v537_v18 = vmul.f32 %v527_v34, %v5393_v5  ;;  %v721_v16 = vrot.slane %v701_v40, %v5656_v62  ;;  %v905_v24 = vrot.slane %v885_v41, %v5405_v8 }
  0x4b   : > { %4913 = vmatpush1.bf16.msk.msra.mxu0 %vm5540_vm12, %v6500_v13  ;;  %v539_v34 = vmul.f32 %v535_v14, %v5398_v7  ;;  %v913_v40 = vrot.slane %v893_v15, %v5405_v8 }
  0x4c   : > { %4915 = vmatprep.subr.msk.bf16.mxu0 %vm5551_vm1, %v6500_v13  ;;  %v917_v41 = vrot.slane %v897_v17, %v5405_v8 }
  0x4f   : > { %4917 = vmatpush1.bf16.msk.msra.mxu0 %vm5560_vm6, %v6500_v13 }
  0x50   : > { %4919 = vmatprep.subr.msk.bf16.mxu0 %vm5571_vm10, %v6500_v13  ;;  %vm6512_vm10 = vmmov 0  }
  0x51   : > { %4874 = vmatprep.mubr.msk.f32.mxu1 %vm6512_vm10, %v6502_v1 }
  0x53   : > { %4921 = vmatpush1.bf16.msk.msra.mxu0 %vm5580_vm2, %v6500_v13  ;;  %vm1582_vm2 = vcmp.eq.s32.totalorder %v1429_v46, %v5480_v58  ;;  %v889_v46 = vrot.slane %v487_v61, %v888_v25  ;;  %v1097_v61 = vrot.slane %v1077_v42, %v5408_v9  ;;  %v1101_v25 = vrot.slane %v1081_v48, %v5408_v9 }
  0x54   : > { %4923 = vmatprep.subr.msk.bf16.mxu0 %vm5591_vm9, %v6500_v13  ;;  %vm5611_vm7 = vmpackc.low %vm1584_vm3, %vm1582_vm2  ;;  %vm1586_vm2 = vcmp.eq.s32.totalorder %v1443_v53, %v5480_v58  ;;  %vm1588_vm3 = vcmp.eq.s32.totalorder %v1450_v55, %v5480_v58  ;;  %v1085_v42 = vrot.slane %v5663_v19, %v5408_v9 }
  0x55   : > { %v6556_v50 = vsel %vm5611_vm7, 4294967295, %v6555_v50  ;;  %vm5620_vm9 = vmpackc.low %vm1583_vm15, %vm1581_vm13  ;;  %vm1587_vm13 = vcmp.eq.s32.totalorder %v1450_v55, %v5484_v60 }
  0x56   : > { %v6558_v51 = vsel %vm5620_vm9, 4294967295, %v6557_v51 }
  0x57   : > { %4925 = vmatpush1.bf16.msk.msra.mxu0 %vm5600_vm0, %v6500_v13  ;;  %vm5629_vm0 = vmpackc.low %vm1588_vm3, %vm1586_vm2 }
  0x58   : > { %4927 = vmatprep.subr.msk.bf16.mxu0 %vm5611_vm7, %v6500_v13  ;;  %v6560_v56 = vsel %vm5629_vm0, 4294967295, %v6559_v56  ;;  %vm1585_vm7 = vcmp.eq.s32.totalorder %v1443_v53, %v5484_v60  ;;  %v531_v53 = vrot.slane %v511_v30, %v5653_v59  ;;  %v725_v30 = vrot.slane %v705_v6, %v5656_v62 }
  0x59   : > { %vm5638_vm15 = vmpackc.low %vm1587_vm13, %vm1585_vm7  ;;  %vm6563_vm7 = vcmask 64512  }
  0x5a   : > { %v6562_v57 = vsel %vm5638_vm15, 4294967295, %v6561_v57  ;;  %v538_v5 = vmul.f32 %v531_v53, %v5414_v11  ;;  %vm6565_vm2 = vmmov %vm6563_vm7 }
  0x5b   : > { %4929 = vmatpush1.bf16.msk.msra.mxu0 %vm5620_vm9, %v6500_v13  ;;  %vm6566_vm3 = vmmov %vm6565_vm2 }
  0x5c   : > { %4931 = vmatprep.subr.msk.bf16.mxu0 %vm5629_vm0, %v6500_v13  ;;  %vm6568_vm13 = vmmov %vm6565_vm2 }
  0x5f   : > { %4933 = vmatpush1.bf16.msk.msra.mxu0 %vm5638_vm15, %v6500_v13 }
  0x60   : > { %4867 = vmatprep.subr.mxu0 %v6502_v1 }
  0xe9   : > { %v614_v31 = vpop.f32.mrb[0].mxu1 }
  0xea   : > { %v726_v36 = vmul.f32 %v713_v21, %v614_v31  ;;  %v616_v37 = vpop.f32.mrb[1].mxu1  ;;  %v909_v31 = vrot.slane %v889_v46, %v5405_v8  ;;  %v1089_v46 = vrot.slane %v5663_v19, %v1080_v28 }
  0xeb   : > { %v998_v47 = vpop.f32.mrb[0].mxu0 }
  0xec   : > { %v730_v49 = vadd.f32 %v726_v36, %v536_v29  ;;  %v1000_v55 = vpop.f32.mrb[1].mxu0  ;;  %v727_v29 = vmul.f32 %v717_v43, %v616_v37  ;;  %v489_v36 = vld [vmem:[%s456_s15] sm:$0xf]  ;;  %v1110_v13 = vmul.f32 %v1097_v61, %v998_v47  ;;  %v1109_v28 = vrot.slane %v1089_v46, %v5408_v9 }
  0xed   : > { %v685_v63 = vpop.f32.mrb[2].mxu1  ;;  %v1111_v53 = vmul.f32 %v1101_v25, %v1000_v55  ;;  %v1122_v14 = vrot.slane %v489_v36, %v5408_v9  ;;  %v1126_v15 = vrot.slane %v489_v36, %v5405_v8 }
  0xee   : > { %v687_v21 = vpop.f32.mrb[3].mxu1  ;;  %v728_v37 = vmul.f32 %v721_v16, %v685_v63  ;;  %v731_v48 = vadd.f32 %v727_v29, %v537_v18  ;;  %v1105_v16 = vrot.slane %v1085_v42, %v5408_v9 }
  0xef   : > { %v729_v1 = vmul.f32 %v725_v30, %v687_v21 }
  0xf0   : > { %v732_v58 = vadd.f32 %v728_v37, %v538_v5 }
  0xf1   : > { %v806_v35 = vpop.f32.mrb[4].mxu1  ;;  %v733_v47 = vadd.f32 %v729_v1, %v539_v34 }
  0xf2   : > { %v918_v43 = vmul.f32 %v905_v24, %v806_v35  ;;  %v808_v6 = vpop.f32.mrb[5].mxu1  ;;  %v1134_v35 = vrot.slane %v489_v36, %v5653_v59 }
  0xf3   : > { %v919_v11 = vmul.f32 %v909_v31, %v808_v6  ;;  %v1130_v31 = vrot.slane %v489_v36, %v5656_v62 }
  0xf4   : > { %v922_v7 = vadd.f32 %v918_v43, %v730_v49 }
  0xf5   : > { %v923_v60 = vadd.f32 %v919_v11, %v731_v48  ;;  %v877_v17 = vpop.f32.mrb[6].mxu1 }
  0xf6   : > { %v1114_v2 = vadd.f32 %v1110_v13, %v922_v7  ;;  %v920_v12 = vmul.f32 %v913_v40, %v877_v17  ;;  %v879_v63 = vpop.f32.mrb[7].mxu1 }
  0xf7   : > { %v1115_v24 = vadd.f32 %v1111_v53, %v923_v60  ;;  %v921_v19 = vmul.f32 %v917_v41, %v879_v63 }
  0xf8   : > { %v1139_v18 = vadd.f32 %v1122_v14, %v1114_v2  ;;  %v924_v55 = vadd.f32 %v920_v12, %v732_v58 }
  0xf9   : > { %v1140_v49 = vadd.f32 %v1126_v15, %v1115_v24  ;;  %v925_v21 = vadd.f32 %v921_v19, %v733_v47  ;;  %v1069_v61 = vpop.f32.mrb[8].mxu1  ;;  %v6564_v24 = vmov 0.0  }
  0xfa   : > { %v4430_v29 = vmul.f32 -1.442695, %v1139_v18  ;;  %v1112_v30 = vmul.f32 %v1105_v16, %v1069_v61  ;;  %v1071_v25 = vpop.f32.mrb[9].mxu1 }
  0xfb   : > { %v4431_v13 = vmul.f32 -1.442695, %v1140_v49  ;;  %v1113_v5 = vmul.f32 %v1109_v28, %v1071_v25 }
  0xfc   : > { %5241 = vpow2.f32 %v4430_v29  ;;  %v1116_v1 = vadd.f32 %v1112_v30, %v924_v55 }
  0xfd   : > { %5243 = vpow2.f32 %v4431_v13  ;;  %v1117_v60 = vadd.f32 %v1113_v5, %v925_v21 }
  0xfe   : > { %v1141_v34 = vadd.f32 %v1130_v31, %v1116_v1 }
  0xff   : > { %v1142_v40 = vadd.f32 %v1134_v35, %v1117_v60 }
 0x100   : > { %v4432_v2 = vmul.f32 -1.442695, %v1141_v34 }
 0x101   : > { %v4433_v12 = vmul.f32 -1.442695, %v1142_v40 }
 0x102   : > { %5245 = vpow2.f32 %v4432_v2 }
 0x103   : > { %5247 = vpow2.f32 %v4433_v12 }
 0x106   : > { %v5242_v58 = vpop.eup %5241 }
 0x107   : > { %v5244_v41 = vpop.eup %5243  ;;  %v1155_v37 = vadd.f32 1.0, %v5242_v58 }
 0x108   : > { %v1156_v42 = vadd.f32 1.0, %v5244_v41 }
 0x10a   : > { %5249 = vrcp.f32 %v1156_v42 }
 0x10b   : > { %5251 = vrcp.f32 %v1155_v37 }
 0x10c   : > { %v5246_v62 = vpop.eup %5245 }
 0x10d   : > { %v5248_v43 = vpop.eup %5247  ;;  %v1157_v6 = vadd.f32 1.0, %v5246_v62 }
 0x10e   : > { %v1158_v59 = vadd.f32 1.0, %v5248_v43 }
 0x10f   : > { %5253 = vrcp.f32 %v1157_v6 }
 0x110   : > { %5255 = vrcp.f32 %v1158_v59 }
 0x114   : > { %v5250_v36 = vpop.eup %5249 }
 0x115   : > { %v5708_v46 = vpop.f32.mrb[2].mxu0  ;;  %v5252_v11 = vpop.eup %5251  ;;  %v5712_v7 = vmul.f32 %v5250_v36, %v1140_v49 }
 0x116   : > { %v5710_v48 = vpop.f32.mrb[3].mxu0  ;;  %v5718_v63 = vmul.f32 %v5252_v11, %v1139_v18  ;;  %v491_v18 = vld [vmem:[%s464_s18] sm:$0x3] }
 0x117   : > { %v5723_v16 = vmul.f32 %v5470_v52, %v5712_v7  ;;  %v6567_v52 = vmov 1.0|1.0   ;;  %v1316_v21 = vrot.slane %v491_v18, %v5408_v9  ;;  %v1320_v31 = vrot.slane %v491_v18, %v5405_v8 }
 0x118   : > { %v5735_v19 = vmul.f32 %v5473_v54, %v5718_v63 }
 0x119   : > { %v5254_v53 = vpop.eup %5253  ;;  %v1324_v58 = vmul.f32 %v1320_v31, %v5712_v7 }
 0x11a   : > { %v5256_v14 = vpop.eup %5255  ;;  %v5714_v15 = vmul.f32 %v5254_v53, %v1141_v34  ;;  %v1323_v34 = vmul.f32 %v1316_v21, %v5718_v63 }
 0x11b   : > { %v5716_v17 = vmul.f32 %v5256_v14, %v1142_v40 }
 0x11c   : > { %4873 = vmatpush3.msra.mxu1 %v5714_v15 }
 0x11d   : > { %4875 = vmatmul.mubr.msk.f32.vlgmr.msra.gmra.mrb[10].mxu1 %vm6563_vm7, %v5447_v20  ;;  %2103 = vmatprep.subr.mxu1 %v5710_v48  ;;  %v1653_v47 = vmul.f32 %v5716_v17, %v5714_v15  ;;  %vm6569_vm7 = vmmov %vm6565_vm2 }
 0x11e   : > { %2104 = vmatpush1.msra.mxu1 %v5708_v46  ;;  %2167 = vmatprep.mubr.f32.mxu1 %v6564_v24 }
 0x11f   : > { %1719 = vmatmul.mubr.f32.vlgmr.msra.gmra.mrb[4].mxu0 %v1653_v47  ;;  %2174 = vmatprep.subr.mxu1 %v5723_v16  ;;  %v6577_v47 = vld [vmem:[#allocation3_spill] sm:$0xff] }
 0x120   : > { %4868 = vmatpush3.msra.mxu0 %v5714_v15  ;;  %4869 = vmatprep.mubr.msk.f32.mxu0 %vm6512_vm10, %v6564_v24  ;;  %vm6574_vm10 = vnez %v6556_v50  ;;  %v3890_v50 = vand.u32 15, %v3852_v26 }
 0x121   : > { %4536 = vmatmul.mubr.msk.f32.vlgmr.msra.gmra.mrb[12].mxu1 %vm6565_vm2, %v5447_v20  ;;  %1807 = vmatprep.subr.mxu0 %v5710_v48 }
 0x122   : > { %2175 = vmatpush1.msra.mxu1 %v5735_v19  ;;  %2238 = vmatprep.mubr.f32.mxu1 %v6564_v24 }
 0x123   : > { %4870 = vmatmul.mubr.msk.f32.vlgmr.msra.gmra.mrb[6].mxu0 %vm6566_vm3, %v5412_v10  ;;  %4967 = vmatprep.subr.msk.bf16.mxu1 %vm5490_vm11, %v6567_v52  ;;  %vm6570_vm3 = vnez %v6548_v38  ;;  %v3856_v38 = vadd.s32 184, %v6598_v0 }
 0x124   : > { %1808 = vmatpush1.msra.mxu0 %v5708_v46  ;;  %1871 = vmatprep.mubr.f32.mxu0 %v6564_v24 }
 0x125   : > { %1878 = vmatprep.subr.mxu0 %v5723_v16  ;;  %4537 = vmatmul.mubr.msk.f32.vlgmr.msra.gmra.mrb[14].mxu1 %vm6568_vm13, %v5447_v20  ;;  %vm6571_vm13 = vnez %v6550_v39  ;;  %v1726_v20 = vsub.f32 %v5710_v48, %v5710_v48 }
 0x126   : > { %4969 = vmatpush1.bf16.msk.msra.mxu1 %vm5499_vm14, %v6567_v52  ;;  %2310 = vmatprep.mubr.f32.mxu1 %v6564_v24 }
 0x127   : > { %4501 = vmatmul.mubr.msk.f32.vlgmr.msra.gmra.mrb[8].mxu0 %vm6569_vm7, %v5412_v10  ;;  %4971 = vmatprep.subr.msk.bf16.mxu1 %vm5513_vm4, %v6567_v52  ;;  %vm6572_vm7 = vnez %v6552_v44  ;;  %v1729_v28 = vmul.f32 1.442695, %v1726_v20  ;;  %v3876_v44 = vand.u32 15, %v3850_v22 }
 0x128   : > { %1879 = vmatpush1.msra.mxu0 %v5735_v19  ;;  %1942 = vmatprep.mubr.f32.mxu0 %v6564_v24 }
 0x129   : > { %4935 = vmatprep.subr.msk.bf16.mxu0 %vm5490_vm11, %v6567_v52 }
 0x12a   : > { %4973 = vmatpush1.bf16.msk.msra.mxu1 %vm5520_vm5, %v6567_v52 }
 0x12b   : > { %4502 = vmatmul.mubr.msk.f32.vlgmr.msra.gmra.mrb[10].mxu0 %vm6565_vm2, %v5412_v10  ;;  %4975 = vmatprep.subr.msk.bf16.mxu1 %vm5531_vm8, %v6567_v52  ;;  %vm6573_vm2 = vnez %v6554_v45  ;;  %v1725_v10 = vsub.f32 %v5708_v46, %v5708_v46  ;;  %v3883_v45 = vand.u32 15, %v3851_v23 }
 0x12c   : > { %4937 = vmatpush1.bf16.msk.msra.mxu0 %vm5499_vm14, %v6567_v52  ;;  %2014 = vmatprep.mubr.f32.mxu0 %v6564_v24 }
 0x12d   : > { %4939 = vmatprep.subr.msk.bf16.mxu0 %vm5513_vm4, %v6567_v52  ;;  %v1727_v54 = vmul.f32 1.442695, %v1725_v10 }
 0x12e   : > { %4977 = vmatpush1.bf16.msk.msra.mxu1 %vm5540_vm12, %v6567_v52 }
 0x12f   : > { %4979 = vmatprep.subr.msk.bf16.mxu1 %vm5551_vm1, %v6567_v52  ;;  %5257 = vpow2.f32 %v1727_v54 }
 0x130   : > { %4941 = vmatpush1.bf16.msk.msra.mxu0 %vm5520_vm5, %v6567_v52  ;;  %5259 = vpow2.f32 %v1729_v28 }
 0x131   : > { %4943 = vmatprep.subr.msk.bf16.mxu0 %vm5531_vm8, %v6567_v52 }
 0x132   : > { %4981 = vmatpush1.bf16.msk.msra.mxu1 %vm5560_vm6, %v6567_v52 }
 0x133   : > { %4983 = vmatprep.subr.msk.bf16.mxu1 %vm6570_vm3, %v6567_v52 }
 0x134   : > { %4945 = vmatpush1.bf16.msk.msra.mxu0 %vm5540_vm12, %v6567_v52 }
 0x135   : > { %4947 = vmatprep.subr.msk.bf16.mxu0 %vm5551_vm1, %v6567_v52 }
 0x136   : > { %4985 = vmatpush1.bf16.msk.msra.mxu1 %vm6571_vm13, %v6567_v52 }
 0x137   : > { %4987 = vmatprep.subr.msk.bf16.mxu1 %vm6572_vm7, %v6567_v52 }
 0x138   : > { %4949 = vmatpush1.bf16.msk.msra.mxu0 %vm5560_vm6, %v6567_v52 }
 0x139   : > { %4951 = vmatprep.subr.msk.bf16.mxu0 %vm6570_vm3, %v6567_v52  ;;  %v5258_v29 = vpop.eup %5257 }
 0x13a   : > { %4989 = vmatpush1.bf16.msk.msra.mxu1 %vm6573_vm2, %v6567_v52  ;;  %v5260_v25 = vpop.eup %5259 }
 0x13b   : > { %4991 = vmatprep.subr.msk.bf16.mxu1 %vm6574_vm10, %v6567_v52 }
 0x13c   : > { %4953 = vmatpush1.bf16.msk.msra.mxu0 %vm6571_vm13, %v6567_v52 }
 0x13d   : > { %4955 = vmatprep.subr.msk.bf16.mxu0 %vm6572_vm7, %v6567_v52 }
 0x13e   : > { %4993 = vmatpush1.bf16.msk.msra.mxu1 %vm5620_vm9, %v6567_v52 }
 0x13f   : > { %4995 = vmatprep.subr.msk.bf16.mxu1 %vm5629_vm0, %v6567_v52 }
 0x140   : > { %4957 = vmatpush1.bf16.msk.msra.mxu0 %vm6573_vm2, %v6567_v52 }
 0x141   : > { %4959 = vmatprep.subr.msk.bf16.mxu0 %vm6574_vm10, %v6567_v52 }
 0x142   : > { %4997 = vmatpush1.bf16.msk.msra.mxu1 %vm5638_vm15, %v6567_v52 }
 0x143   : > { %4882 = vmatprep.subr.mxu1 %v6564_v24 }
 0x144   : > { %4961 = vmatpush1.bf16.msk.msra.mxu0 %vm5620_vm9, %v6567_v52 }
 0x145   : > { %4963 = vmatprep.subr.msk.bf16.mxu0 %vm5629_vm0, %v6567_v52  ;;  %vm6575_vm0 = vmmov 0  }
 0x148   : > { %4965 = vmatpush1.bf16.msk.msra.mxu0 %vm5638_vm15, %v6567_v52  ;;  %vm2625_vm15 = vcmp.eq.s32.totalorder %v5385_v4, 4 }
 0x149   : > { %4877 = vmatprep.subr.mxu0 %v6564_v24  ;;  %v4605_v60 = vsel %vm2625_vm15, 1.0, %v6564_v24  ;;  %vm6576_vm15 = vcmask 64512  }
 0x14a   : > { %vm6578_vm9 = vmmov %vm6576_vm15 }
 0x1f0   : > { %v2099_v55 = vpop.f32.mrb[10].mxu1 }
 0x1f1   : > { %v2245_v49 = vmul.f32 %v2099_v55, %v5716_v17  ;;  %v4876_v61 = vpop.f32.mrb[11].mxu1 }
 0x1f2   : > { %v1720_v30 = vpop.f32.mrb[4].mxu0 }
 0x1f3   : > { %v1731_v13 = vmul.f32 %v5258_v29, %v1720_v30  ;;  %v1722_v5 = vpop.f32.mrb[5].mxu0  ;;  %2311 = vmatmul.mubr.f32.vlgmr.msra.gmra.mrb[16].mxu1 %v2245_v49 }
 0x1f4   : > { %v1732_v35 = vmul.f32 %v5260_v25, %v1722_v5  ;;  %4883 = vmatpush3.msra.mxu1 %v5714_v15  ;;  %v5871_v1 = vpop.f32.mrb[12].mxu1  ;;  %4884 = vmatprep.mubr.msk.f32.mxu1 %vm6575_vm0, %v6564_v24 }
 0x1f5   : > { %v1733_v40 = vmul.f32 %v1731_v13, %v5735_v19  ;;  %v2317_v2 = vsub.f32 %v5708_v46, %v5871_v1  ;;  %2701 = vmatprep.subr.mxu1 %v5710_v48  ;;  %v5881_v12 = vpop.f32.mrb[13].mxu1 }
 0x1f6   : > { %v1734_v41 = vmul.f32 %v1732_v35, %v5723_v16  ;;  %v2318_v42 = vsub.f32 %v5710_v48, %v5881_v12  ;;  %v1803_v37 = vpop.f32.mrb[6].mxu0 }
 0x1f7   : > { %v5887_v62 = vadd.f32 %v1733_v40, %v1323_v34  ;;  %v1949_v43 = vmul.f32 %v1803_v37, %v5716_v17  ;;  %v4871_v6 = vpop.f32.mrb[7].mxu0  ;;  %4885 = vmatmul.mubr.msk.f32.vlgmr.msra.gmra.mrb[18].mxu1 %vm6576_vm15, %v4605_v60  ;;  %v2319_v54 = vmul.f32 1.442695, %v2317_v2 }
 0x1f8   : > { %v5891_v59 = vadd.f32 %v1734_v41, %v1324_v58  ;;  %2702 = vmatpush1.msra.mxu1 %v5708_v46  ;;  %2765 = vmatprep.mubr.f32.mxu1 %v6564_v24  ;;  %v5895_v36 = vpop.f32.mrb[14].mxu1  ;;  %v2321_v28 = vmul.f32 1.442695, %v2318_v42 }
 0x1f9   : > { %2772 = vmatprep.subr.mxu1 %v5723_v16  ;;  %2015 = vmatmul.mubr.f32.vlgmr.msra.gmra.mrb[12].mxu0 %v1949_v43  ;;  %v5898_v11 = vpop.f32.mrb[15].mxu1  ;;  %5261 = vpow2.f32 %v2319_v54 }
 0x1fa   : > { %4878 = vmatpush3.msra.mxu0 %v5714_v15  ;;  %v1873_v53 = vpop.f32.mrb[8].mxu0  ;;  %4879 = vmatprep.mubr.msk.f32.mxu0 %vm6575_vm0, %v6564_v24  ;;  %5263 = vpow2.f32 %v2321_v28 }
 0x1fb   : > { %v2021_v7 = vsub.f32 %v5708_v46, %v1873_v53  ;;  %2399 = vmatprep.subr.mxu0 %v5710_v48  ;;  %v1875_v14 = vpop.f32.mrb[9].mxu0  ;;  %4607 = vmatmul.mubr.msk.f32.vlgmr.msra.gmra.mrb[20].mxu1 %vm6576_vm15, %v4605_v60  ;;  %vm6579_vm15 = vmmov %vm6578_vm9 }
 0x1fc   : > { %v2022_v63 = vsub.f32 %v5710_v48, %v1875_v14  ;;  %2773 = vmatpush1.msra.mxu1 %v5735_v19  ;;  %2836 = vmatprep.mubr.f32.mxu1 %v6564_v24 }
 0x1fd   : > { %4880 = vmatmul.mubr.msk.f32.vlgmr.msra.gmra.mrb[14].mxu0 %vm6578_vm9, %v6577_v47  ;;  %5031 = vmatprep.subr.msk.bf16.mxu1 %vm5490_vm11, %v6567_v52  ;;  %v2023_v18 = vmul.f32 1.442695, %v2021_v7 }
 0x1fe   : > { %2400 = vmatpush1.msra.mxu0 %v5708_v46  ;;  %2463 = vmatprep.mubr.f32.mxu0 %v6564_v24  ;;  %v5916_v10 = vpop.f32.mrb[10].mxu0  ;;  %v2025_v55 = vmul.f32 1.442695, %v2022_v63 }
 0x1ff   : > { %2470 = vmatprep.subr.mxu0 %v5723_v16  ;;  %v5919_v20 = vpop.f32.mrb[11].mxu0  ;;  %4608 = vmatmul.mubr.msk.f32.vlgmr.msra.gmra.mrb[22].mxu1 %vm6579_vm15, %v4605_v60  ;;  %vm6580_vm15 = vmmov %vm6578_vm9  ;;  %5265 = vpow2.f32 %v2023_v18 }
 0x200   : > { %5033 = vmatpush1.bf16.msk.msra.mxu1 %vm5499_vm14, %v6567_v52  ;;  %2908 = vmatprep.mubr.f32.mxu1 %v6564_v24  ;;  %5267 = vpow2.f32 %v2025_v55 }
 0x201   : > { %4571 = vmatmul.mubr.msk.f32.vlgmr.msra.gmra.mrb[16].mxu0 %vm6578_vm9, %v6577_v47  ;;  %5035 = vmatprep.subr.msk.bf16.mxu1 %vm5513_vm4, %v6567_v52  ;;  %vm6581_vm9 = vnez %v6558_v51 }
 0x202   : > { %2471 = vmatpush1.msra.mxu0 %v5735_v19  ;;  %2534 = vmatprep.mubr.f32.mxu0 %v6564_v24 }
 0x203   : > { %4999 = vmatprep.subr.msk.bf16.mxu0 %vm5490_vm11, %v6567_v52  ;;  %v5262_v49 = vpop.eup %5261 }
 0x204   : > { %5037 = vmatpush1.bf16.msk.msra.mxu1 %vm5520_vm5, %v6567_v52  ;;  %v5264_v61 = vpop.eup %5263 }
 0x205   : > { %4572 = vmatmul.mubr.msk.f32.vlgmr.msra.gmra.mrb[18].mxu0 %vm6580_vm15, %v6577_v47  ;;  %5039 = vmatprep.subr.msk.bf16.mxu1 %vm5531_vm8, %v6567_v52  ;;  %vm6582_vm15 = vnez %v6560_v56 }
 0x206   : > { %5001 = vmatpush1.bf16.msk.msra.mxu0 %vm5499_vm14, %v6567_v52  ;;  %2606 = vmatprep.mubr.f32.mxu0 %v6564_v24 }
 0x207   : > { %5003 = vmatprep.subr.msk.bf16.mxu0 %vm5513_vm4, %v6567_v52 }
 0x208   : > { %5041 = vmatpush1.bf16.msk.msra.mxu1 %vm5540_vm12, %v6567_v52 }
 0x209   : > { %5043 = vmatprep.subr.msk.bf16.mxu1 %vm5551_vm1, %v6567_v52  ;;  %v5266_v60 = vpop.eup %5265 }
 0x20a   : > { %5005 = vmatpush1.bf16.msk.msra.mxu0 %vm5520_vm5, %v6567_v52  ;;  %v5268_v40 = vpop.eup %5267 }
 0x20b   : > { %5007 = vmatprep.subr.msk.bf16.mxu0 %vm5531_vm8, %v6567_v52 }
 0x20c   : > { %5045 = vmatpush1.bf16.msk.msra.mxu1 %vm5560_vm6, %v6567_v52 }
 0x20d   : > { %5047 = vmatprep.subr.msk.bf16.mxu1 %vm6570_vm3, %v6567_v52 }
 0x20e   : > { %5009 = vmatpush1.bf16.msk.msra.mxu0 %vm5540_vm12, %v6567_v52 }
 0x20f   : > { %5011 = vmatprep.subr.msk.bf16.mxu0 %vm5551_vm1, %v6567_v52 }
 0x210   : > { %5049 = vmatpush1.bf16.msk.msra.mxu1 %vm6571_vm13, %v6567_v52 }
 0x211   : > { %5051 = vmatprep.subr.msk.bf16.mxu1 %vm6572_vm7, %v6567_v52 }
 0x212   : > { %5013 = vmatpush1.bf16.msk.msra.mxu0 %vm5560_vm6, %v6567_v52 }
 0x213   : > { %5015 = vmatprep.subr.msk.bf16.mxu0 %vm6570_vm3, %v6567_v52 }
 0x214   : > { %5053 = vmatpush1.bf16.msk.msra.mxu1 %vm6573_vm2, %v6567_v52 }
 0x215   : > { %5055 = vmatprep.subr.msk.bf16.mxu1 %vm6574_vm10, %v6567_v52 }
 0x216   : > { %5017 = vmatpush1.bf16.msk.msra.mxu0 %vm6571_vm13, %v6567_v52  ;;  %vm6583_vm13 = vnez %v6562_v57 }
 0x217   : > { %5019 = vmatprep.subr.msk.bf16.mxu0 %vm6572_vm7, %v6567_v52 }
 0x218   : > { %5057 = vmatpush1.bf16.msk.msra.mxu1 %vm6581_vm9, %v6567_v52 }
 0x219   : > { %5059 = vmatprep.subr.msk.bf16.mxu1 %vm6582_vm15, %v6567_v52 }
 0x21a   : > { %5021 = vmatpush1.bf16.msk.msra.mxu0 %vm6573_vm2, %v6567_v52 }
 0x21b   : > { %5023 = vmatprep.subr.msk.bf16.mxu0 %vm6574_vm10, %v6567_v52 }
 0x21c   : > { %5061 = vmatpush1.bf16.msk.msra.mxu1 %vm6583_vm13, %v6567_v52 }
 0x21d   : > { %4892 = vmatprep.subr.mxu1 %v6564_v24 }
 0x21e   : > { %5025 = vmatpush1.bf16.msk.msra.mxu0 %vm6581_vm9, %v6567_v52 }
 0x21f   : > { %5027 = vmatprep.subr.msk.bf16.mxu0 %vm6582_vm15, %v6567_v52  ;;  %vm2927_vm15 = vcmp.eq.s32.totalorder %v5385_v4, 5 }
 0x222   : > { %5029 = vmatpush1.bf16.msk.msra.mxu0 %vm6583_vm13, %v6567_v52  ;;  %vm3229_vm13 = vcmp.eq.s32.totalorder %v5385_v4, 6 }
 0x223   : > { %4887 = vmatprep.subr.mxu0 %v6564_v24  ;;  %v4677_v42 = vsel %vm3229_vm13, 1.0, %v6564_v24  ;;  %vm6584_vm13 = vcmask 64512  }
 0x224   : > { %vm6585_vm9 = vmmov %vm6584_vm13 }
 0x2c6   : > { %v2312_v21 = vpop.f32.mrb[16].mxu1 }
 0x2c7   : > { %v2323_v29 = vmul.f32 %v5262_v49, %v2312_v21  ;;  %v2314_v30 = vpop.f32.mrb[17].mxu1 }
 0x2c8   : > { %v2324_v31 = vmul.f32 %v5264_v61, %v2314_v30 }
 0x2c9   : > { %v2325_v25 = vmul.f32 %v2323_v29, %v5895_v36 }
 0x2ca   : > { %v2326_v13 = vmul.f32 %v2324_v31, %v5898_v11  ;;  %v2697_v5 = vpop.f32.mrb[18].mxu1 }
 0x2cb   : > { %v2843_v35 = vmul.f32 %v2697_v5, %v5716_v17  ;;  %v4886_v1 = vpop.f32.mrb[19].mxu1 }
 0x2cc   : > { %v2016_v34 = vpop.f32.mrb[12].mxu0 }
 0x2cd   : > { %v2027_v2 = vmul.f32 %v5266_v60, %v2016_v34  ;;  %v2018_v12 = vpop.f32.mrb[13].mxu0  ;;  %2909 = vmatmul.mubr.f32.vlgmr.msra.gmra.mrb[24].mxu1 %v2843_v35 }
 0x2ce   : > { %v2028_v58 = vmul.f32 %v5268_v40, %v2018_v12  ;;  %4893 = vmatpush3.msra.mxu1 %v5714_v15  ;;  %v6036_v41 = vpop.f32.mrb[20].mxu1  ;;  %4894 = vmatprep.mubr.msk.f32.mxu1 %vm6575_vm0, %v6564_v24 }
 0x2cf   : > { %v2029_v37 = vmul.f32 %v2027_v2, %v5916_v10  ;;  %v2915_v43 = vsub.f32 %v5708_v46, %v6036_v41  ;;  %3305 = vmatprep.subr.mxu1 %v5710_v48  ;;  %v6045_v6 = vpop.f32.mrb[21].mxu1 }
 0x2d0   : > { %v2030_v36 = vmul.f32 %v2028_v58, %v5919_v20  ;;  %v2916_v11 = vsub.f32 %v5710_v48, %v6045_v6  ;;  %v2395_v53 = vpop.f32.mrb[14].mxu0 }
 0x2d1   : > { %v2031_v7 = vadd.f32 %v2029_v37, %v5887_v62  ;;  %v2541_v14 = vmul.f32 %v2395_v53, %v5716_v17  ;;  %v4881_v63 = vpop.f32.mrb[15].mxu0  ;;  %4895 = vmatmul.mubr.msk.f32.vlgmr.msra.gmra.mrb[26].mxu1 %vm6584_vm13, %v4677_v42  ;;  %v2917_v29 = vmul.f32 1.442695, %v2915_v43 }
 0x2d2   : > { %v2032_v47 = vadd.f32 %v2030_v36, %v5891_v59  ;;  %3306 = vmatpush1.msra.mxu1 %v5708_v46  ;;  %3369 = vmatprep.mubr.f32.mxu1 %v6564_v24  ;;  %v6057_v10 = vpop.f32.mrb[22].mxu1  ;;  %v4641_v59 = vsel %vm2927_vm15, 1.0, %v6564_v24  ;;  %vm6586_vm15 = vmmov %vm6585_vm9  ;;  %v2919_v30 = vmul.f32 1.442695, %v2916_v11 }
 0x2d3   : > { %3376 = vmatprep.subr.mxu1 %v5723_v16  ;;  %2607 = vmatmul.mubr.f32.vlgmr.msra.gmra.mrb[20].mxu0 %v2541_v14  ;;  %v6060_v20 = vpop.f32.mrb[23].mxu1  ;;  %v6062_v62 = vadd.f32 %v2325_v25, %v2031_v7  ;;  %5269 = vpow2.f32 %v2917_v29 }
 0x2d4   : > { %4888 = vmatpush3.msra.mxu0 %v5714_v15  ;;  %v2465_v54 = vpop.f32.mrb[16].mxu0  ;;  %4889 = vmatprep.mubr.msk.f32.mxu0 %vm6575_vm0, %v6564_v24  ;;  %v6068_v28 = vadd.f32 %v2326_v13, %v2032_v47  ;;  %5271 = vpow2.f32 %v2919_v30 }
 0x2d5   : > { %v2613_v18 = vsub.f32 %v5708_v46, %v2465_v54  ;;  %3003 = vmatprep.subr.mxu0 %v5710_v48  ;;  %v2467_v55 = vpop.f32.mrb[17].mxu0  ;;  %4679 = vmatmul.mubr.msk.f32.vlgmr.msra.gmra.mrb[28].mxu1 %vm6584_vm13, %v4677_v42  ;;  %vm6587_vm13 = vmmov %vm6585_vm9 }
 0x2d6   : > { %v2614_v49 = vsub.f32 %v5710_v48, %v2467_v55  ;;  %3377 = vmatpush1.msra.mxu1 %v5735_v19  ;;  %3440 = vmatprep.mubr.f32.mxu1 %v6564_v24 }
 0x2d7   : > { %4890 = vmatmul.mubr.msk.f32.vlgmr.msra.gmra.mrb[22].mxu0 %vm6585_vm9, %v4641_v59  ;;  %5095 = vmatprep.subr.msk.bf16.mxu1 %vm5490_vm11, %v6567_v52  ;;  %v2615_v31 = vmul.f32 1.442695, %v2613_v18 }
 0x2d8   : > { %3004 = vmatpush1.msra.mxu0 %v5708_v46  ;;  %3067 = vmatprep.mubr.f32.mxu0 %v6564_v24  ;;  %v6082_v21 = vpop.f32.mrb[18].mxu0  ;;  %v2617_v25 = vmul.f32 1.442695, %v2614_v49 }
 0x2d9   : > { %3074 = vmatprep.subr.mxu0 %v5723_v16  ;;  %v6085_v61 = vpop.f32.mrb[19].mxu0  ;;  %4680 = vmatmul.mubr.msk.f32.vlgmr.msra.gmra.mrb[30].mxu1 %vm6586_vm15, %v4677_v42  ;;  %vm6588_vm15 = vnez %v6550_v39  ;;  %5273 = vpow2.f32 %v2615_v31 }
 0x2da   : > { %5097 = vmatpush1.bf16.msk.msra.mxu1 %vm5499_vm14, %v6567_v52  ;;  %3512 = vmatprep.mubr.f32.mxu1 %v6564_v24  ;;  %5275 = vpow2.f32 %v2617_v25 }
 0x2db   : > { %4643 = vmatmul.mubr.msk.f32.vlgmr.msra.gmra.mrb[24].mxu0 %vm6585_vm9, %v4641_v59  ;;  %5099 = vmatprep.subr.msk.bf16.mxu1 %vm5513_vm4, %v6567_v52  ;;  %vm6589_vm9 = vnez %v6558_v51  ;;  %v3897_v51 = vand.u32 15, %v3853_v27 }
 0x2dc   : > { %3075 = vmatpush1.msra.mxu0 %v5735_v19  ;;  %3138 = vmatprep.mubr.f32.mxu0 %v6564_v24 }
 0x2dd   : > { %5063 = vmatprep.subr.msk.bf16.mxu0 %vm5490_vm11, %v6567_v52  ;;  %v5270_v13 = vpop.eup %5269 }
 0x2de   : > { %5101 = vmatpush1.bf16.msk.msra.mxu1 %vm5520_vm5, %v6567_v52  ;;  %v5272_v35 = vpop.eup %5271 }
 0x2df   : > { %4644 = vmatmul.mubr.msk.f32.vlgmr.msra.gmra.mrb[26].mxu0 %vm6587_vm13, %v4641_v59  ;;  %5103 = vmatprep.subr.msk.bf16.mxu1 %vm5531_vm8, %v6567_v52  ;;  %vm6590_vm13 = vnez %v6560_v56 }
 0x2e0   : > { %5065 = vmatpush1.bf16.msk.msra.mxu0 %vm5499_vm14, %v6567_v52  ;;  %3210 = vmatprep.mubr.f32.mxu0 %v6564_v24 }
 0x2e1   : > { %5067 = vmatprep.subr.msk.bf16.mxu0 %vm5513_vm4, %v6567_v52 }
 0x2e2   : > { %5105 = vmatpush1.bf16.msk.msra.mxu1 %vm5540_vm12, %v6567_v52 }
 0x2e3   : > { %5107 = vmatprep.subr.msk.bf16.mxu1 %vm5551_vm1, %v6567_v52  ;;  %v5274_v42 = vpop.eup %5273 }
 0x2e4   : > { %5069 = vmatpush1.bf16.msk.msra.mxu0 %vm5520_vm5, %v6567_v52  ;;  %v5276_v43 = vpop.eup %5275 }
 0x2e5   : > { %5071 = vmatprep.subr.msk.bf16.mxu0 %vm5531_vm8, %v6567_v52 }
 0x2e6   : > { %5109 = vmatpush1.bf16.msk.msra.mxu1 %vm5560_vm6, %v6567_v52 }
 0x2e7   : > { %5111 = vmatprep.subr.msk.bf16.mxu1 %vm6570_vm3, %v6567_v52 }
 0x2e8   : > { %5073 = vmatpush1.bf16.msk.msra.mxu0 %vm5540_vm12, %v6567_v52 }
 0x2e9   : > { %5075 = vmatprep.subr.msk.bf16.mxu0 %vm5551_vm1, %v6567_v52 }
 0x2ea   : > { %5113 = vmatpush1.bf16.msk.msra.mxu1 %vm6588_vm15, %v6567_v52 }
 0x2eb   : > { %5115 = vmatprep.subr.msk.bf16.mxu1 %vm6572_vm7, %v6567_v52 }
 0x2ec   : > { %5077 = vmatpush1.bf16.msk.msra.mxu0 %vm5560_vm6, %v6567_v52 }
 0x2ed   : > { %5079 = vmatprep.subr.msk.bf16.mxu0 %vm6570_vm3, %v6567_v52 }
 0x2ee   : > { %5117 = vmatpush1.bf16.msk.msra.mxu1 %vm6573_vm2, %v6567_v52 }
 0x2ef   : > { %5119 = vmatprep.subr.msk.bf16.mxu1 %vm6574_vm10, %v6567_v52 }
 0x2f0   : > { %5081 = vmatpush1.bf16.msk.msra.mxu0 %vm6588_vm15, %v6567_v52  ;;  %vm6591_vm15 = vnez %v6562_v57 }
 0x2f1   : > { %5083 = vmatprep.subr.msk.bf16.mxu0 %vm6572_vm7, %v6567_v52 }
 0x2f2   : > { %5121 = vmatpush1.bf16.msk.msra.mxu1 %vm6589_vm9, %v6567_v52 }
 0x2f3   : > { %5123 = vmatprep.subr.msk.bf16.mxu1 %vm6590_vm13, %v6567_v52 }
 0x2f4   : > { %5085 = vmatpush1.bf16.msk.msra.mxu0 %vm6573_vm2, %v6567_v52 }
 0x2f5   : > { %5087 = vmatprep.subr.msk.bf16.mxu0 %vm6574_vm10, %v6567_v52 }
 0x2f6   : > { %5125 = vmatpush1.bf16.msk.msra.mxu1 %vm6591_vm15, %v6567_v52 }
 0x2f7   : > { %5159 = vmatprep.subr.msk.bf16.mxu1 %vm5490_vm11, %v6567_v52 }
 0x2f8   : > { %5089 = vmatpush1.bf16.msk.msra.mxu0 %vm6589_vm9, %v6567_v52 }
 0x2f9   : > { %5091 = vmatprep.subr.msk.bf16.mxu0 %vm6590_vm13, %v6567_v52  ;;  %vm6592_vm13 = vcmask 64512  }
 0x2fc   : > { %5093 = vmatpush1.bf16.msk.msra.mxu0 %vm6591_vm15, %v6567_v52  ;;  %vm3531_vm15 = vcmp.eq.s32.totalorder %v5385_v4, 7 }
 0x2fd   : > { %4897 = vmatprep.subr.mxu0 %v6564_v24 }
 0x3a0   : > { %v2910_v5 = vpop.f32.mrb[24].mxu1 }
 0x3a1   : > { %v2921_v1 = vmul.f32 %v5270_v13, %v2910_v5  ;;  %v2912_v60 = vpop.f32.mrb[25].mxu1 }
 0x3a2   : > { %v2922_v34 = vmul.f32 %v5272_v35, %v2912_v60  ;;  %v3911_v35 = vand.u32 15, %v3855_v33  ;;  %v3857_v60 = vadd.s32 192, %v6598_v0 }
 0x3a3   : > { %v2923_v40 = vmul.f32 %v2921_v1, %v6057_v10  ;;  %v3918_v1 = vand.u32 15, %v3856_v38  ;;  %v3863_v38 = vadd.s32 240, %v6598_v0 }
 0x3a4   : > { %v2924_v2 = vmul.f32 %v2922_v34, %v6060_v20  ;;  %v3301_v12 = vpop.f32.mrb[26].mxu1  ;;  %v3858_v34 = vadd.s32 200, %v6598_v0 }
 0x3a5   : > { %v3447_v58 = vmul.f32 %v3301_v12, %v5716_v17  ;;  %v4896_v41 = vpop.f32.mrb[27].mxu1 }
 0x3a6   : > { %v2608_v37 = vpop.f32.mrb[20].mxu0 }
 0x3a7   : > { %v2619_v6 = vmul.f32 %v5274_v42, %v2608_v37  ;;  %v2610_v36 = vpop.f32.mrb[21].mxu0  ;;  %3513 = vmatmul.mubr.f32.vlgmr.msra.gmra.mrb[32].mxu1 %v3447_v58 }
 0x3a8   : > { %v2620_v11 = vmul.f32 %v5276_v43, %v2610_v36  ;;  %v6200_v53 = vpop.f32.mrb[28].mxu1  ;;  %5161 = vmatpush1.bf16.msk.msra.mxu1 %vm5499_vm14, %v6567_v52 }
 0x3a9   : > { %v2621_v7 = vmul.f32 %v2619_v6, %v6082_v21  ;;  %v3519_v14 = vsub.f32 %v5708_v46, %v6200_v53  ;;  %v6208_v63 = vpop.f32.mrb[29].mxu1  ;;  %5163 = vmatprep.subr.msk.bf16.mxu1 %vm5513_vm4, %v6567_v52 }
 0x3aa   : > { %v2622_v47 = vmul.f32 %v2620_v11, %v6085_v61  ;;  %v3520_v10 = vsub.f32 %v5710_v48, %v6208_v63  ;;  %v2999_v20 = vpop.f32.mrb[22].mxu0 }
 0x3ab   : > { %v2623_v54 = vadd.f32 %v2621_v7, %v6062_v62  ;;  %v3145_v59 = vmul.f32 %v2999_v20, %v5716_v17  ;;  %v4891_v18 = vpop.f32.mrb[23].mxu0  ;;  %v4713_v62 = vsel %vm3531_vm15, 1.0, %v6564_v24  ;;  %vm6594_vm15 = vnez %v6550_v39 }
 0x3ac   : > { %v2624_v55 = vadd.f32 %v2622_v47, %v6068_v28  ;;  %v6220_v49 = vpop.f32.mrb[30].mxu1  ;;  %5165 = vmatpush1.bf16.msk.msra.mxu1 %vm5520_vm5, %v6567_v52  ;;  %v3869_v39 = vand.u32 15, %v3849_v3  ;;  %v3521_v12 = vmul.f32 1.442695, %v3519_v14  ;;  %v3523_v58 = vmul.f32 1.442695, %v3520_v10 }
 0x3ad   : > { %3211 = vmatmul.mubr.f32.vlgmr.msra.gmra.mrb[28].mxu0 %v3145_v59  ;;  %v6225_v21 = vpop.f32.mrb[31].mxu1  ;;  %v6227_v61 = vadd.f32 %v2923_v40, %v2623_v54  ;;  %5167 = vmatprep.subr.msk.bf16.mxu1 %vm5531_vm8, %v6567_v52  ;;  %v3925_v40 = vand.u32 15, %v3857_v60 }
 0x3ae   : > { %4898 = vmatpush3.msra.mxu0 %v5714_v15  ;;  %v6233_v4 = vpop.f32.mrb[24].mxu0  ;;  %4899 = vmatprep.mubr.msk.f32.mxu0 %vm6575_vm0, %v6564_v24  ;;  %v6238_v28 = vadd.f32 %v2924_v2, %v2624_v55  ;;  %vm6593_vm0 = vmmov %vm6592_vm13  ;;  %v3932_v2 = vand.u32 15, %v3858_v34  ;;  %5277 = vpow2.f32 %v3521_v12 }
 0x3af   : > { %v3217_v29 = vsub.f32 %v5708_v46, %v6233_v4  ;;  %3607 = vmatprep.subr.mxu0 %v5710_v48  ;;  %v6243_v30 = vpop.f32.mrb[25].mxu0  ;;  %5279 = vpow2.f32 %v3523_v58 }
 0x3b0   : > { %v3218_v31 = vsub.f32 %v5710_v48, %v6243_v30  ;;  %5169 = vmatpush1.bf16.msk.msra.mxu1 %vm5540_vm12, %v6567_v52 }
 0x3b1   : > { %4900 = vmatmul.mubr.msk.f32.vlgmr.msra.gmra.mrb[30].mxu0 %vm6592_vm13, %v4713_v62  ;;  %5171 = vmatprep.subr.msk.bf16.mxu1 %vm5551_vm1, %v6567_v52  ;;  %vm6595_vm13 = vmmov %vm6593_vm0  ;;  %v3219_v41 = vmul.f32 1.442695, %v3217_v29 }
 0x3b2   : > { %3608 = vmatpush1.msra.mxu0 %v5708_v46  ;;  %3671 = vmatprep.mubr.f32.mxu0 %v6564_v24  ;;  %v6256_v15 = vpop.f32.mrb[26].mxu0  ;;  %v3221_v42 = vmul.f32 1.442695, %v3218_v31 }
 0x3b3   : > { %3678 = vmatprep.subr.mxu0 %v5723_v16  ;;  %v6259_v25 = vpop.f32.mrb[27].mxu0  ;;  %v6600_v16 = vld [vmem:[#allocation5_spill] sm:$0xff]  ;;  %5281 = vpow2.f32 %v3219_v41 }
 0x3b4   : > { %5173 = vmatpush1.bf16.msk.msra.mxu1 %vm5560_vm6, %v6567_v52  ;;  %5283 = vpow2.f32 %v3221_v42 }
 0x3b5   : > { %4715 = vmatmul.mubr.msk.f32.vlgmr.msra.gmra.mrb[32].mxu0 %vm6593_vm0, %v4713_v62  ;;  %5175 = vmatprep.subr.msk.bf16.mxu1 %vm6570_vm3, %v6567_v52 }
 0x3b6   : > { %3679 = vmatpush1.msra.mxu0 %v5735_v19  ;;  %3742 = vmatprep.mubr.f32.mxu0 %v6564_v24 }
 0x3b7   : > { %5127 = vmatprep.subr.msk.bf16.mxu0 %vm5490_vm11, %v6567_v52  ;;  %vm6596_vm11 = vnez %v6560_v56  ;;  %v3904_v56 = vand.u32 15, %v3854_v32  ;;  %v3861_v32 = vadd.s32 224, %v6598_v0 }
 0x3b8   : > { %5177 = vmatpush1.bf16.msk.msra.mxu1 %vm6594_vm15, %v6567_v52  ;;  %v5278_v37 = vpop.eup %5277 }
 0x3b9   : > { %4716 = vmatmul.mubr.msk.f32.vlgmr.msra.gmra.mrb[34].mxu0 %vm6595_vm13, %v4713_v62  ;;  %5179 = vmatprep.subr.msk.bf16.mxu1 %vm6572_vm7, %v6567_v52  ;;  %v5280_v6 = vpop.eup %5279 }
 0x3ba   : > { %5129 = vmatpush1.bf16.msk.msra.mxu0 %vm5499_vm14, %v6567_v52  ;;  %3814 = vmatprep.mubr.f32.mxu0 %v6564_v24  ;;  %vm6597_vm14 = vnez %v6562_v57  ;;  %v6599_v57 = vld [vmem:[#allocation4_spill] sm:$0xff] }
 0x3bb   : > { %5131 = vmatprep.subr.msk.bf16.mxu0 %vm5513_vm4, %v6567_v52  ;;  %vm4058_vm4 = vcmp.eq.s32.totalorder %v3869_v39, %v6599_v57  ;;  %vm6372_vm0 = vcmp.eq.s32.totalorder %v3904_v56, %v6599_v57 }
 0x3bc   : > { %5181 = vmatpush1.bf16.msk.msra.mxu1 %vm6573_vm2, %v6567_v52 }
 0x3bd   : > { %5183 = vmatprep.subr.msk.bf16.mxu1 %vm6574_vm10, %v6567_v52  ;;  %v5282_v63 = vpop.eup %5281 }
 0x3be   : > { %5133 = vmatpush1.bf16.msk.msra.mxu0 %vm5520_vm5, %v6567_v52  ;;  %vm4060_vm5 = vcmp.eq.s32.totalorder %v3876_v44, %v6599_v57  ;;  %v5284_v10 = vpop.eup %5283 }
 0x3bf   : > { %5135 = vmatprep.subr.msk.bf16.mxu0 %vm5531_vm8, %v6567_v52  ;;  %vm4057_vm8 = vcmp.eq.s32.totalorder %v3869_v39, %v6600_v16  ;;  %v3864_v39 = vadd.s32 248, %v6598_v0 }
 0x3c0   : > { %5185 = vmatpush1.bf16.msk.msra.mxu1 %vm6589_vm9, %v6567_v52 }
 0x3c1   : > { %5187 = vmatprep.subr.msk.bf16.mxu1 %vm6596_vm11, %v6567_v52 }
 0x3c2   : > { %5137 = vmatpush1.bf16.msk.msra.mxu0 %vm5540_vm12, %v6567_v52  ;;  %vm4059_vm12 = vcmp.eq.s32.totalorder %v3876_v44, %v6600_v16  ;;  %v3967_v44 = vand.u32 15, %v3863_v38 }
 0x3c3   : > { %5139 = vmatprep.subr.msk.bf16.mxu0 %vm5551_vm1, %v6567_v52  ;;  %vm5190_vm1 = vmpackc.low %vm4060_vm5, %vm4058_vm4  ;;  %vm4067_vm4 = vcmp.eq.s32.totalorder %v3904_v56, %v6600_v16  ;;  %vm4070_vm5 = vcmp.eq.s32.totalorder %v3911_v35, %v6599_v57 }
 0x3c4   : > { %5189 = vmatpush1.bf16.msk.msra.mxu1 %vm6597_vm14, %v6567_v52 }
 0x3c5   : > { %5191 = vmatprep.subr.msk.bf16.mxu1 %vm5190_vm1, %v6567_v52 }
 0x3c6   : > { %5141 = vmatpush1.bf16.msk.msra.mxu0 %vm5560_vm6, %v6567_v52  ;;  %vm4062_vm6 = vcmp.eq.s32.totalorder %v3883_v45, %v6599_v57 }
 0x3c7   : > { %5143 = vmatprep.subr.msk.bf16.mxu0 %vm6570_vm3, %v6567_v52  ;;  %vm6356_vm3 = vcmp.eq.s32.totalorder %v3883_v45, %v6600_v16  ;;  %v3974_v45 = vand.u32 15, %v3864_v39 }
 0x3ca   : > { %5145 = vmatpush1.bf16.msk.msra.mxu0 %vm6594_vm15, %v6567_v52 }
 0x3cb   : > { %5147 = vmatprep.subr.msk.bf16.mxu0 %vm6572_vm7, %v6567_v52  ;;  %vm6361_vm7 = vcmp.eq.s32.totalorder %v3890_v50, %v6600_v16 }
 0x3cc   : > { %vm5196_vm13 = vmpackc.low %vm6361_vm7, %vm6356_vm3  ;;  %vm4074_vm3 = vcmp.eq.s32.totalorder %v3925_v40, %v6599_v57  ;;  %vm4076_vm7 = vcmp.eq.s32.totalorder %v3932_v2, %v6599_v57 }
 0x3ce   : > { %5149 = vmatpush1.bf16.msk.msra.mxu0 %vm6573_vm2, %v6567_v52  ;;  %vm5192_vm2 = vmpackc.low %vm4059_vm12, %vm4057_vm8  ;;  %vm4072_vm8 = vcmp.eq.s32.totalorder %v3918_v1, %v6599_v57 }
 0x3cf   : > { %5151 = vmatprep.subr.msk.bf16.mxu0 %vm6574_vm10, %v6567_v52  ;;  %vm4064_vm10 = vcmp.eq.s32.totalorder %v3890_v50, %v6599_v57  ;;  %5193 = vmatpush1.bf16.msk.msra.mxu1 %vm5192_vm2, %v6567_v52  ;;  %vm5202_vm1 = vmpackc.low %vm4072_vm8, %vm4070_vm5  ;;  %v480_v50 = vld [vmem:[%s437_s22 + $0x8] sm:$0xff] }
 0x3d0   : > { %vm5194_vm15 = vmpackc.low %vm4064_vm10, %vm4062_vm6  ;;  %vm4069_vm6 = vcmp.eq.s32.totalorder %v3911_v35, %v6600_v16  ;;  %vm4071_vm10 = vcmp.eq.s32.totalorder %v3918_v1, %v6600_v16  ;;  %v4750_v56 = vmul.f32 -1.442695, %v480_v50 }
 0x3d1   : > { %5195 = vmatprep.subr.msk.bf16.mxu1 %vm5194_vm15, %v6567_v52  ;;  %vm5204_vm2 = vmpackc.low %vm4071_vm10, %vm4069_vm6  ;;  %vm4075_vm15 = vcmp.eq.s32.totalorder %v3932_v2, %v6600_v16 }
 0x3d2   : > { %5153 = vmatpush1.bf16.msk.msra.mxu0 %vm6589_vm9, %v6567_v52  ;;  %vm6367_vm9 = vcmp.eq.s32.totalorder %v3897_v51, %v6599_v57 }
 0x3d3   : > { %5155 = vmatprep.subr.msk.bf16.mxu0 %vm6596_vm11, %v6567_v52  ;;  %vm5198_vm11 = vmpackc.low %vm6372_vm0, %vm6367_vm9  ;;  %5197 = vmatpush1.bf16.msk.msra.mxu1 %vm5196_vm13, %v6567_v52  ;;  %vm4073_vm0 = vcmp.eq.s32.totalorder %v3925_v40, %v6600_v16 }
 0x3d4   : > { %5199 = vmatprep.subr.msk.bf16.mxu1 %vm5198_vm11, %v6567_v52  ;;  %vm5206_vm9 = vmpackc.low %vm4076_vm7, %vm4074_vm3 }
 0x3d5   : > { %vm5208_vm13 = vmpackc.low %vm4075_vm15, %vm4073_vm0  ;;  %vm4088_vm0 = vcmp.eq.s32.totalorder %v3974_v45, %v6599_v57  ;;  %vm4085_vm15 = vcmp.eq.s32.totalorder %v3967_v44, %v6600_v16 }
 0x3d6   : > { %5157 = vmatpush1.bf16.msk.msra.mxu0 %vm6597_vm14, %v6567_v52  ;;  %vm4065_vm14 = vcmp.eq.s32.totalorder %v3897_v51, %v6600_v16 }
 0x3d7   : > { %vm5200_vm12 = vmpackc.low %vm4067_vm4, %vm4065_vm14 }
 0x3d8   : > { %5201 = vmatpush1.bf16.msk.msra.mxu1 %vm5200_vm12, %v6567_v52 }
 0x3d9   : > { %5203 = vmatprep.subr.msk.bf16.mxu1 %vm5202_vm1, %v6567_v52 }
 0x3dc   : > { %5205 = vmatpush1.bf16.msk.msra.mxu1 %vm5204_vm2, %v6567_v52 }
 0x3dd   : > { %5207 = vmatprep.subr.msk.bf16.mxu1 %vm5206_vm9, %v6567_v52  ;;  %vm4086_vm9 = vcmp.eq.s32.totalorder %v3967_v44, %v6599_v57 }
 0x3e0   : > { %5209 = vmatpush1.bf16.msk.msra.mxu1 %vm5208_vm13, %v6567_v52  ;;  %vm4087_vm13 = vcmp.eq.s32.totalorder %v3974_v45, %v6600_v16 }
 0x47a   : > { %v3514_v43 = vpop.f32.mrb[32].mxu1 }
 0x47b   : > { %v3525_v36 = vmul.f32 %v5278_v37, %v3514_v43  ;;  %v3516_v11 = vpop.f32.mrb[33].mxu1 }
 0x47c   : > { %v3526_v53 = vmul.f32 %v5280_v6, %v3516_v11 }
 0x47d   : > { %v3527_v7 = vmul.f32 %v3525_v36, %v6220_v49 }
 0x47e   : > { %v3528_v14 = vmul.f32 %v3526_v53, %v6225_v21 }
 0x480   : > { %v3212_v47 = vpop.f32.mrb[28].mxu0 }
 0x481   : > { %v3223_v20 = vmul.f32 %v5282_v63, %v3212_v47  ;;  %v3214_v54 = vpop.f32.mrb[29].mxu0 }
 0x482   : > { %v3224_v59 = vmul.f32 %v5284_v10, %v3214_v54 }
 0x483   : > { %v3225_v18 = vmul.f32 %v3223_v20, %v6256_v15 }
 0x484   : > { %v3226_v55 = vmul.f32 %v3224_v59, %v6259_v25  ;;  %v3603_v4 = vpop.f32.mrb[30].mxu0  ;;  %v493_v59 = vld [vmem:[%s472_s25] sm:$0x3] }
 0x485   : > { %v3227_v62 = vadd.f32 %v3225_v18, %v6227_v61  ;;  %v3749_v29 = vmul.f32 %v3603_v4, %v5716_v17  ;;  %v4901_v30 = vpop.f32.mrb[31].mxu0  ;;  %v3859_v17 = vadd.s32 208, %v6598_v0  ;;  %v3860_v61 = vadd.s32 216, %v6598_v0 }
 0x486   : > { %v3228_v49 = vadd.f32 %v3226_v55, %v6238_v28  ;;  %v4238_v18 = vrot.slane %v493_v59, %v5408_v9  ;;  %v4242_v4 = vrot.slane %v493_v59, %v5405_v8 }
 0x487   : > { %3815 = vmatmul.mubr.f32.vlgmr.msra.gmra.mrb[36].mxu0 %v3749_v29  ;;  %v6424_v21 = vadd.f32 %v3527_v7, %v3227_v62  ;;  %v3939_v28 = vand.u32 15, %v3859_v17  ;;  %v3946_v27 = vand.u32 15, %v3860_v61 }
 0x488   : > { %v3673_v31 = vpop.f32.mrb[32].mxu0  ;;  %v6426_v3 = vadd.f32 %v3528_v14, %v3228_v49 }
 0x489   : > { %v3821_v22 = vsub.f32 %v5708_v46, %v3673_v31  ;;  %v3675_v23 = vpop.f32.mrb[33].mxu0  ;;  %vm4078_vm11 = vcmp.eq.s32.totalorder %v3939_v28, %v6599_v57  ;;  %vm4080_vm14 = vcmp.eq.s32.totalorder %v3946_v27, %v6599_v57  ;;  %v3862_v46 = vadd.s32 232, %v6598_v0  ;;  %v479_v0 = vld [vmem:[%s437_s22] sm:$0xff] }
 0x48a   : > { %v3822_v15 = vsub.f32 %v5710_v48, %v3675_v23  ;;  %vm5210_vm4 = vmpackc.low %vm4080_vm14, %vm4078_vm11  ;;  %vm4077_vm5 = vcmp.eq.s32.totalorder %v3939_v28, %v6600_v16  ;;  %vm4079_vm8 = vcmp.eq.s32.totalorder %v3946_v27, %v6600_v16  ;;  %v3953_v48 = vand.u32 15, %v3861_v32 }
 0x48b   : > { %5211 = vmatprep.subr.msk.bf16.mxu1 %vm5210_vm4, %v6567_v52  ;;  %vm5212_vm12 = vmpackc.low %vm4079_vm8, %vm4077_vm5  ;;  %v3960_v33 = vand.u32 15, %v3862_v46  ;;  %v4749_v51 = vmul.f32 -1.442695, %v479_v0  ;;  %v3823_v19 = vmul.f32 1.442695, %v3821_v22 }
 0x48c   : > { %v6430_v25 = vpop.f32.mrb[34].mxu0  ;;  %5213 = vmatpush1.bf16.msk.msra.mxu1 %vm5212_vm12, %v6567_v52  ;;  %vm4082_vm1 = vcmp.eq.s32.totalorder %v3953_v48, %v6599_v57  ;;  %vm4081_vm3 = vcmp.eq.s32.totalorder %v3953_v48, %v6600_v16  ;;  %vm5218_vm11 = vmpackc.low %vm4088_vm0, %vm4086_vm9 }
 0x48d   : > { %v6432_v26 = vpop.f32.mrb[35].mxu0  ;;  %vm4084_vm6 = vcmp.eq.s32.totalorder %v3960_v33, %v6599_v57  ;;  %vm4083_vm7 = vcmp.eq.s32.totalorder %v3960_v33, %v6600_v16  ;;  %vm5220_vm14 = vmpackc.low %vm4087_vm13, %vm4085_vm15  ;;  %5285 = vpow2.f32 %v4749_v51  ;;  %v3825_v16 = vmul.f32 1.442695, %v3822_v15 }
 0x48e   : > { %vm5214_vm10 = vmpackc.low %vm4084_vm6, %vm4082_vm1  ;;  %5287 = vpow2.f32 %v4750_v56 }
 0x48f   : > { %5215 = vmatprep.subr.msk.bf16.mxu1 %vm5214_vm10, %v6567_v52  ;;  %vm5216_vm2 = vmpackc.low %vm4083_vm7, %vm4081_vm3  ;;  %5289 = vpow2.f32 %v3823_v19 }
 0x490   : > { %5217 = vmatpush1.bf16.msk.msra.mxu1 %vm5216_vm2, %v6567_v52  ;;  %5291 = vpow2.f32 %v3825_v16 }
 0x491   : > { %5219 = vmatprep.subr.msk.bf16.mxu1 %vm5218_vm11, %v6567_v52 }
 0x494   : > { %5221 = vmatpush1.bf16.msk.msra.mxu1 %vm5220_vm14, %v6567_v52 }
 0x497   : > { %v5286_v57 = vpop.eup %5285 }
 0x498   : > { %v5288_v24 = vpop.eup %5287  ;;  %v3839_v13 = vadd.f32 1.0, %v5286_v57 }
 0x499   : > { %v3840_v5 = vadd.f32 1.0, %v5288_v24  ;;  %v5290_v52 = vpop.eup %5289 }
 0x49a   : > { %5293 = vrcp.f32 %v3839_v13  ;;  %v5292_v35 = vpop.eup %5291 }
 0x49b   : > { %5295 = vrcp.f32 %v3840_v5 }
 0x4a4   : > { %v5294_v1 = vpop.eup %5293 }
 0x4a5   : > { %v5296_v34 = vpop.eup %5295  ;;  %v3845_v41 = vmul.f32 %v5294_v1, %v479_v0 }
 0x4a6   : > { %v3846_v37 = vmul.f32 %v5296_v34, %v480_v50 }
 0x55a   : > { %v3816_v60 = vpop.f32.mrb[36].mxu0 }
 0x55b   : > { %v3827_v40 = vmul.f32 %v5290_v52, %v3816_v60  ;;  %v3818_v2 = vpop.f32.mrb[37].mxu0 }
 0x55c   : > { %v3828_v12 = vmul.f32 %v5292_v35, %v3818_v2 }
 0x55d   : > { %v3829_v58 = vmul.f32 %v3827_v40, %v6430_v25 }
 0x55e   : > { %v3830_v42 = vmul.f32 %v3828_v12, %v6432_v26 }
 0x55f   : > { %v3831_v43 = vadd.f32 %v3829_v58, %v6424_v21 }
 0x560   : > { %v3832_v6 = vadd.f32 %v3830_v42, %v6426_v3 }
 0x561   : > { %v3847_v36 = vmul.f32 %v3845_v41, %v3831_v43 }
 0x562   : > { %v3848_v11 = vmul.f32 %v3846_v37, %v3832_v6 }
 0x563   : > { %v4153_v7 = vmul.f32 %v3847_v36, %v3847_v36 }
 0x564   : > { %v4154_v53 = vmul.f32 %v3848_v11, %v3848_v11 }
 0x566   : > { %4219 = vmatprep.mubr.f32.mxu1 %v4154_v53 }
 0x567   : > { %4220 = vmatmul.mubr.f32.vlgmr.msra.gmra.mrb[34].mxu1 %v4153_v7 }
 0x63a   : > { %v4221_v14 = vpop.f32.mrb[34].mxu1 }
 0x63b   : > { %v4226_v63 = vmul.f32 0.0625, %v4221_v14  ;;  %v4223_v47 = vpop.f32.mrb[35].mxu1 }
 0x63c   : > { %v4227_v10 = vmul.f32 0.0625, %v4223_v47 }
 0x63d   : > { %v4228_v20 = vadd.f32 1e-05, %v4226_v63 }
 0x63e   : > { %v4229_v54 = vadd.f32 1e-05, %v4227_v10 }
 0x63f   : > { %5297 = vrsqrt.f32 %v4228_v20 }
 0x640   : > { %5299 = vrsqrt.f32 %v4229_v54 }
 0x649   : > { %v5298_v55 = vpop.eup %5297 }
 0x64a   : > { %v5300_v62 = vpop.eup %5299  ;;  %v4232_v29 = vmul.f32 %v5298_v55, %v3847_v36 }
 0x64b   : > { %v4233_v30 = vmul.f32 %v5300_v62, %v3848_v11 }
 0x64c   : > { %v4245_v49 = vmul.f32 %v4238_v18, %v4232_v29 }
 0x64d   : > { %v4246_v21 = vmul.f32 %v4242_v4, %v4233_v30 }
 0x64e   : > { %4247 = vst [vmem:[%s477_s28] sm:$0xff] %v4245_v49 }
 0x64f   : > { %4248 = vst [vmem:[%s477_s28 + $0x8] sm:$0xff] %v4246_v21 }
 0x650 PF: > { %s19_s30 = sadd.s32 1, %s5307_s30  }
 0x651   : > { %p16_p5 = scmp.ge.s32.totalorder %s19_s30, 4  }
 0x653   :  { %18 = sbr.rel (!%p16_p5) target bundleno = 1 (0x1), region = 110 }

</bundles_post_ra>
